<compile_context>
chip_gen: v5e
topology: v5e:2x2
jax: 0.10.0
libtpu: 0.0.40
codegen_flags: <defaults>
</compile_context>

<pallas_src>
import functools

import jax
import jax.numpy as jnp
import numpy as np
from jax import lax
from jax.experimental import pallas as pl
from jax.experimental.pallas import tpu as pltpu

# Small shapes consistent with the module's forward (dec_input_shape[-1]=35,
# lstm_dim=128, output_dims=35); batch/seq shrunk for a quick test.
B = 2          # batch
T = 8          # sequence length
D_IN = 35      # input feature dim
H = 128        # lstm hidden dim
O = 35         # output dims
O_PAD = 128    # lane-dense padded logit width (sliced back in the wrapper)
BN_EPS = 1e-5  # PyTorch BatchNorm1d default eps
NEG = -1e30    # bias for padded logit columns: exp() -> 0, never the row max


def batch_model_kernel(x_ref, h0_ref, c0_ref, wih_ref, whh_ref, b_ref,
                       gamma_ref, beta_ref, wout_ref, bout_ref, out_ref):
    # ---------------- Hoisted input projection (no serial dependency) --------
    # One (T*B, D_IN) x (D_IN, 4H) matmul + single bias broadcast, f32.
    xg = jnp.dot(x_ref[...], wih_ref[...],
                 preferred_element_type=jnp.float32) + b_ref[...]   # (T*B, 4H)

    # Recurrent weights cast to bf16 once: halves per-step weight streaming on
    # the MXU; accumulation stays f32 via preferred_element_type.
    whh = whh_ref[...].astype(jnp.bfloat16)                         # (H, 4H)

    # ---------------- LSTM recurrence (PyTorch gate order: i, f, g, o) -------
    # Fully unrolled: T is a compile-time constant -> static slices, per-step
    # chain is just h @ whh + gates; h tiles kept live in registers (no VMEM
    # scratch round-trip).
    h = h0_ref[...]                                                 # (B, H) f32
    c = c0_ref[...]                                                 # (B, H) f32
    hs = []
    for t in range(T):
        gates = xg[t * B:(t + 1) * B, :] + jnp.dot(
            h.astype(jnp.bfloat16), whh,
            preferred_element_type=jnp.float32)                     # (B, 4H) f32
        i = jax.nn.sigmoid(gates[:, 0 * H:1 * H])
        f = jax.nn.sigmoid(gates[:, 1 * H:2 * H])
        g = jnp.tanh(gates[:, 2 * H:3 * H])
        o = jax.nn.sigmoid(gates[:, 3 * H:4 * H])
        c = f * c + i * g
        h = o * jnp.tanh(c)
        hs.append(h)

    y = jnp.concatenate(hs, axis=0)                                 # (T*B, H)

    # ---------------- BatchNorm1d (training mode: stats over batch & time) ---
    # Single pass over y: sum and sum-of-squares together; biased variance
    # (matches PyTorch's training-mode normalization).
    inv_n = 1.0 / float(T * B)
    s1 = jnp.sum(y, axis=0, keepdims=True)                          # (1, H)
    s2 = jnp.sum(y * y, axis=0, keepdims=True)                      # (1, H)
    mean = s1 * inv_n
    var = s2 * inv_n - mean * mean
    scale = gamma_ref[...] * lax.rsqrt(var + BN_EPS)                # (1, H)
    shift = beta_ref[...] - mean * scale                            # (1, H)
    y_hat = y * scale + shift                                       # one FMA pass

    # ---------------- Linear + LogSoftmax(dim=-1), lane-dense output ---------
    # wout/bout were padded to 128 output lanes once at parameter-prep time;
    # padded columns have zero weight and a -1e30 bias, so they never win the
    # max and contribute exactly 0 to the exp-sum -> log-softmax over the real
    # 35 columns is unchanged.
    z = jnp.dot(y_hat, wout_ref[...],
                preferred_element_type=jnp.float32) + bout_ref[...]  # (T*B, 128)
    m = jnp.max(z, axis=-1, keepdims=True)
    lse = m + jnp.log(jnp.sum(jnp.exp(z - m), axis=-1, keepdims=True))
    out_ref[...] = z - lse                                          # unmasked vst


@jax.jit
def batch_model_forward(x, h0, c0, params):
    """x: (B, T, D_IN); h0, c0: (1, B, H) as in PyTorch LSTM state layout.

    `params` must already contain the lane-padded "wout_p"/"bout_p" (see
    prepare_params); padding is one-time setup, not per-call work.
    """
    x_tm = jnp.transpose(x, (1, 0, 2)).astype(jnp.float32)   # (T, B, D_IN)
    x2 = x_tm.reshape(T * B, D_IN)                           # time-major rows
    h0_ = h0[0].astype(jnp.float32)                          # (B, H)
    c0_ = c0[0].astype(jnp.float32)                          # (B, H)

    vmem = lambda: pl.BlockSpec(memory_space=pltpu.MemorySpace.VMEM)
    out2 = pl.pallas_call(
        batch_model_kernel,
        out_shape=jax.ShapeDtypeStruct((T * B, O_PAD), jnp.float32),
        in_specs=[vmem() for _ in range(10)],
        out_specs=vmem(),
    )(x2, h0_, c0_,
      params["wih"], params["whh"], params["b"],
      params["gamma"], params["beta"], params["wout_p"], params["bout_p"])

    out_tm = out2[:, :O].reshape(T, B, O)                    # drop lane padding
    return jnp.transpose(out_tm, (1, 0, 2))                  # (B, T, O)


def reference_forward(x, h0, c0, p):
    """Pure-JAX reference with identical math, for a numerical sanity check."""
    def step(carry, x_t):
        h, c = carry
        gates = (x_t @ p["wih"] + h @ p["whh"] + p["b"])
        i = jax.nn.sigmoid(gates[:, :H])
        f = jax.nn.sigmoid(gates[:, H:2 * H])
        g = jnp.tanh(gates[:, 2 * H:3 * H])
        o = jax.nn.sigmoid(gates[:, 3 * H:])
        c = f * c + i * g
        h = o * jnp.tanh(c)
        return (h, c), h

    x_tm = jnp.transpose(x, (1, 0, 2))
    _, ys = lax.scan(step, (h0[0], c0[0]), x_tm)             # (T, B, H)
    mean = jnp.mean(ys, axis=(0, 1), keepdims=True)
    var = jnp.mean((ys - mean) ** 2, axis=(0, 1), keepdims=True)
    yh = ((ys - mean) / jnp.sqrt(var + BN_EPS)
          * p["gamma"].reshape(1, 1, H) + p["beta"].reshape(1, 1, H))
    z = yh @ p["wout"] + p["bout"]
    out = jax.nn.log_softmax(z, axis=-1)
    return jnp.transpose(out, (1, 0, 2))


def make_params(key):
    ks = jax.random.split(key, 6)
    scale = 0.1
    return {
        # LSTM weights stored pre-transposed: x @ wih, h @ whh give (B, 4H).
        "wih": scale * jax.random.normal(ks[0], (D_IN, 4 * H), jnp.float32),
        "whh": scale * jax.random.normal(ks[1], (H, 4 * H), jnp.float32),
        "b":   scale * jax.random.normal(ks[2], (1, 4 * H), jnp.float32),
        # BatchNorm1d affine params (PyTorch init: gamma=1, beta=0).
        "gamma": jnp.ones((1, H), jnp.float32),
        "beta":  jnp.zeros((1, H), jnp.float32),
        # Dense_Decoder_1 Linear(H, O).
        "wout": scale * jax.random.normal(ks[3], (H, O), jnp.float32),
        "bout": scale * jax.random.normal(ks[4], (1, O), jnp.float32),
    }


def prepare_params(p):
    """One-time setup: lane-pad the output projection to 128 columns
    (zero weights, -1e30 bias) so the kernel store is an unmasked full-lane
    vst.  Done once here, not per forward call."""
    p = dict(p)
    p["wout_p"] = jnp.zeros((H, O_PAD), jnp.float32).at[:, :O].set(p["wout"])
    p["bout_p"] = jnp.full((1, O_PAD), NEG, jnp.float32).at[:, :O].set(p["bout"])
    return p


if __name__ == "__main__":
    root = jax.random.PRNGKey(0)
    k_par, k_x, k_h, k_c = jax.random.split(root, 4)

    params = prepare_params(make_params(k_par))
    x = jax.random.normal(k_x, (B, T, D_IN), jnp.float32)
    h0 = jax.random.normal(k_h, (1, B, H), jnp.float32)
    c0 = jax.random.normal(k_c, (1, B, H), jnp.float32)

    out = batch_model_forward(x, h0, c0, params)
    out = jax.block_until_ready(out)

    ref = jax.block_until_ready(reference_forward(x, h0, c0, params))
    np.testing.assert_allclose(np.asarray(out), np.asarray(ref),
                               rtol=2e-2, atol=2e-2)
    assert out.shape == (B, T, O)
    assert np.all(np.isfinite(np.asarray(out)))

    print("KERNEL_OK")
</pallas_src>

<mosaic_0001>
module attributes {stable_mosaic.version = 11 : i64} {
  func.func @batch_model_kernel(%arg0: memref<16x35xf32, #tpu.memory_space<vmem>>, %arg1: memref<2x128xf32, #tpu.memory_space<vmem>>, %arg2: memref<2x128xf32, #tpu.memory_space<vmem>>, %arg3: memref<35x512xf32, #tpu.memory_space<vmem>>, %arg4: memref<128x512xf32, #tpu.memory_space<vmem>>, %arg5: memref<1x512xf32, #tpu.memory_space<vmem>>, %arg6: memref<1x128xf32, #tpu.memory_space<vmem>>, %arg7: memref<1x128xf32, #tpu.memory_space<vmem>>, %arg8: memref<128x128xf32, #tpu.memory_space<vmem>>, %arg9: memref<1x128xf32, #tpu.memory_space<vmem>>, %arg10: memref<16x128xf32, #tpu.memory_space<vmem>>) attributes {dimension_semantics = [], scalar_prefetch = 0 : i64, scratch_operands = 0 : i64, tpu.core_type = #tpu.core_type<tc>} {
    %c0 = arith.constant 0 : index
    %c0_0 = arith.constant 0 : index
    %0 = vector.load %arg0[%c0, %c0_0] : memref<16x35xf32, #tpu.memory_space<vmem>>, vector<16x35xf32>
    %c0_1 = arith.constant 0 : index
    %c0_2 = arith.constant 0 : index
    %1 = vector.load %arg3[%c0_1, %c0_2] : memref<35x512xf32, #tpu.memory_space<vmem>>, vector<35x512xf32>
    %cst = arith.constant dense<0.000000e+00> : vector<16x512xf32>
    %2 = tpu.matmul %0, %1, %cst {dimension_numbers = #tpu.dot_dimension_numbers<[1], [0], [0], [1], [0, 0, 1, 1], [], []>} : vector<16x35xf32>, vector<35x512xf32>, vector<16x512xf32> -> vector<16x512xf32>
    %c0_3 = arith.constant 0 : index
    %c0_4 = arith.constant 0 : index
    %3 = vector.load %arg5[%c0_3, %c0_4] : memref<1x512xf32, #tpu.memory_space<vmem>>, vector<1x512xf32>
    %4 = vector.broadcast %3 : vector<1x512xf32> to vector<16x512xf32>
    %5 = arith.addf %2, %4 : vector<16x512xf32>
    %c0_5 = arith.constant 0 : index
    %c0_6 = arith.constant 0 : index
    %6 = vector.load %arg4[%c0_5, %c0_6] : memref<128x512xf32, #tpu.memory_space<vmem>>, vector<128x512xf32>
    %7 = arith.truncf %6 : vector<128x512xf32> to vector<128x512xbf16>
    %c0_7 = arith.constant 0 : index
    %c0_8 = arith.constant 0 : index
    %8 = vector.load %arg1[%c0_7, %c0_8] : memref<2x128xf32, #tpu.memory_space<vmem>>, vector<2x128xf32>
    %c0_9 = arith.constant 0 : index
    %c0_10 = arith.constant 0 : index
    %9 = vector.load %arg2[%c0_9, %c0_10] : memref<2x128xf32, #tpu.memory_space<vmem>>, vector<2x128xf32>
    %10 = vector.extract_strided_slice %5 {offsets = [0, 0], sizes = [2, 512], strides = [1, 1]} : vector<16x512xf32> to vector<2x512xf32>
    %11 = arith.truncf %8 : vector<2x128xf32> to vector<2x128xbf16>
    %cst_11 = arith.constant dense<0.000000e+00> : vector<2x512xf32>
    %12 = tpu.matmul %11, %7, %cst_11 {dimension_numbers = #tpu.dot_dimension_numbers<[1], [0], [0], [1], [0, 0, 1, 1], [], []>} : vector<2x128xbf16>, vector<128x512xbf16>, vector<2x512xf32> -> vector<2x512xf32>
    %13 = arith.addf %10, %12 : vector<2x512xf32>
    %14 = vector.extract_strided_slice %13 {offsets = [0, 0], sizes = [2, 128], strides = [1, 1]} : vector<2x512xf32> to vector<2x128xf32>
    %15 = arith.negf %14 : vector<2x128xf32>
    %16 = math.exp %15 : vector<2x128xf32>
    %cst_12 = arith.constant 1.000000e+00 : f32
    %17 = vector.broadcast %cst_12 : f32 to vector<2x128xf32>
    %18 = arith.addf %17, %16 : vector<2x128xf32>
    %19 = arith.divf %17, %18 : vector<2x128xf32>
    %20 = vector.extract_strided_slice %13 {offsets = [0, 128], sizes = [2, 128], strides = [1, 1]} : vector<2x512xf32> to vector<2x128xf32>
    %21 = arith.negf %20 : vector<2x128xf32>
    %22 = math.exp %21 : vector<2x128xf32>
    %cst_13 = arith.constant 1.000000e+00 : f32
    %23 = vector.broadcast %cst_13 : f32 to vector<2x128xf32>
    %24 = arith.addf %23, %22 : vector<2x128xf32>
    %25 = arith.divf %23, %24 : vector<2x128xf32>
    %26 = vector.extract_strided_slice %13 {offsets = [0, 256], sizes = [2, 128], strides = [1, 1]} : vector<2x512xf32> to vector<2x128xf32>
    %27 = math.tanh %26 : vector<2x128xf32>
    %28 = vector.extract_strided_slice %13 {offsets = [0, 384], sizes = [2, 128], strides = [1, 1]} : vector<2x512xf32> to vector<2x128xf32>
    %29 = arith.negf %28 : vector<2x128xf32>
    %30 = math.exp %29 : vector<2x128xf32>
    %cst_14 = arith.constant 1.000000e+00 : f32
    %31 = vector.broadcast %cst_14 : f32 to vector<2x128xf32>
    %32 = arith.addf %31, %30 : vector<2x128xf32>
    %33 = arith.divf %31, %32 : vector<2x128xf32>
    %34 = arith.mulf %25, %9 : vector<2x128xf32>
    %35 = arith.mulf %19, %27 : vector<2x128xf32>
    %36 = arith.addf %34, %35 : vector<2x128xf32>
    %37 = math.tanh %36 : vector<2x128xf32>
    %38 = arith.mulf %33, %37 : vector<2x128xf32>
    %39 = vector.extract_strided_slice %5 {offsets = [2, 0], sizes = [2, 512], strides = [1, 1]} : vector<16x512xf32> to vector<2x512xf32>
    %40 = arith.truncf %38 : vector<2x128xf32> to vector<2x128xbf16>
    %cst_15 = arith.constant dense<0.000000e+00> : vector<2x512xf32>
    %41 = tpu.matmul %40, %7, %cst_15 {dimension_numbers = #tpu.dot_dimension_numbers<[1], [0], [0], [1], [0, 0, 1, 1], [], []>} : vector<2x128xbf16>, vector<128x512xbf16>, vector<2x512xf32> -> vector<2x512xf32>
    %42 = arith.addf %39, %41 : vector<2x512xf32>
    %43 = vector.extract_strided_slice %42 {offsets = [0, 0], sizes = [2, 128], strides = [1, 1]} : vector<2x512xf32> to vector<2x128xf32>
    %44 = arith.negf %43 : vector<2x128xf32>
    %45 = math.exp %44 : vector<2x128xf32>
    %cst_16 = arith.constant 1.000000e+00 : f32
    %46 = vector.broadcast %cst_16 : f32 to vector<2x128xf32>
    %47 = arith.addf %46, %45 : vector<2x128xf32>
    %48 = arith.divf %46, %47 : vector<2x128xf32>
    %49 = vector.extract_strided_slice %42 {offsets = [0, 128], sizes = [2, 128], strides = [1, 1]} : vector<2x512xf32> to vector<2x128xf32>
    %50 = arith.negf %49 : vector<2x128xf32>
    %51 = math.exp %50 : vector<2x128xf32>
    %cst_17 = arith.constant 1.000000e+00 : f32
    %52 = vector.broadcast %cst_17 : f32 to vector<2x128xf32>
    %53 = arith.addf %52, %51 : vector<2x128xf32>
    %54 = arith.divf %52, %53 : vector<2x128xf32>
    %55 = vector.extract_strided_slice %42 {offsets = [0, 256], sizes = [2, 128], strides = [1, 1]} : vector<2x512xf32> to vector<2x128xf32>
    %56 = math.tanh %55 : vector<2x128xf32>
    %57 = vector.extract_strided_slice %42 {offsets = [0, 384], sizes = [2, 128], strides = [1, 1]} : vector<2x512xf32> to vector<2x128xf32>
    %58 = arith.negf %57 : vector<2x128xf32>
    %59 = math.exp %58 : vector<2x128xf32>
    %cst_18 = arith.constant 1.000000e+00 : f32
    %60 = vector.broadcast %cst_18 : f32 to vector<2x128xf32>
    %61 = arith.addf %60, %59 : vector<2x128xf32>
    %62 = arith.divf %60, %61 : vector<2x128xf32>
    %63 = arith.mulf %54, %36 : vector<2x128xf32>
    %64 = arith.mulf %48, %56 : vector<2x128xf32>
    %65 = arith.addf %63, %64 : vector<2x128xf32>
    %66 = math.tanh %65 : vector<2x128xf32>
    %67 = arith.mulf %62, %66 : vector<2x128xf32>
    %68 = vector.extract_strided_slice %5 {offsets = [4, 0], sizes = [2, 512], strides = [1, 1]} : vector<16x512xf32> to vector<2x512xf32>
    %69 = arith.truncf %67 : vector<2x128xf32> to vector<2x128xbf16>
    %cst_19 = arith.constant dense<0.000000e+00> : vector<2x512xf32>
    %70 = tpu.matmul %69, %7, %cst_19 {dimension_numbers = #tpu.dot_dimension_numbers<[1], [0], [0], [1], [0, 0, 1, 1], [], []>} : vector<2x128xbf16>, vector<128x512xbf16>, vector<2x512xf32> -> vector<2x512xf32>
    %71 = arith.addf %68, %70 : vector<2x512xf32>
    %72 = vector.extract_strided_slice %71 {offsets = [0, 0], sizes = [2, 128], strides = [1, 1]} : vector<2x512xf32> to vector<2x128xf32>
    %73 = arith.negf %72 : vector<2x128xf32>
    %74 = math.exp %73 : vector<2x128xf32>
    %cst_20 = arith.constant 1.000000e+00 : f32
    %75 = vector.broadcast %cst_20 : f32 to vector<2x128xf32>
    %76 = arith.addf %75, %74 : vector<2x128xf32>
    %77 = arith.divf %75, %76 : vector<2x128xf32>
    %78 = vector.extract_strided_slice %71 {offsets = [0, 128], sizes = [2, 128], strides = [1, 1]} : vector<2x512xf32> to vector<2x128xf32>
    %79 = arith.negf %78 : vector<2x128xf32>
    %80 = math.exp %79 : vector<2x128xf32>
    %cst_21 = arith.constant 1.000000e+00 : f32
    %81 = vector.broadcast %cst_21 : f32 to vector<2x128xf32>
    %82 = arith.addf %81, %80 : vector<2x128xf32>
    %83 = arith.divf %81, %82 : vector<2x128xf32>
    %84 = vector.extract_strided_slice %71 {offsets = [0, 256], sizes = [2, 128], strides = [1, 1]} : vector<2x512xf32> to vector<2x128xf32>
    %85 = math.tanh %84 : vector<2x128xf32>
    %86 = vector.extract_strided_slice %71 {offsets = [0, 384], sizes = [2, 128], strides = [1, 1]} : vector<2x512xf32> to vector<2x128xf32>
    %87 = arith.negf %86 : vector<2x128xf32>
    %88 = math.exp %87 : vector<2x128xf32>
    %cst_22 = arith.constant 1.000000e+00 : f32
    %89 = vector.broadcast %cst_22 : f32 to vector<2x128xf32>
    %90 = arith.addf %89, %88 : vector<2x128xf32>
    %91 = arith.divf %89, %90 : vector<2x128xf32>
    %92 = arith.mulf %83, %65 : vector<2x128xf32>
    %93 = arith.mulf %77, %85 : vector<2x128xf32>
    %94 = arith.addf %92, %93 : vector<2x128xf32>
    %95 = math.tanh %94 : vector<2x128xf32>
    %96 = arith.mulf %91, %95 : vector<2x128xf32>
    %97 = vector.extract_strided_slice %5 {offsets = [6, 0], sizes = [2, 512], strides = [1, 1]} : vector<16x512xf32> to vector<2x512xf32>
    %98 = arith.truncf %96 : vector<2x128xf32> to vector<2x128xbf16>
    %cst_23 = arith.constant dense<0.000000e+00> : vector<2x512xf32>
    %99 = tpu.matmul %98, %7, %cst_23 {dimension_numbers = #tpu.dot_dimension_numbers<[1], [0], [0], [1], [0, 0, 1, 1], [], []>} : vector<2x128xbf16>, vector<128x512xbf16>, vector<2x512xf32> -> vector<2x512xf32>
    %100 = arith.addf %97, %99 : vector<2x512xf32>
    %101 = vector.extract_strided_slice %100 {offsets = [0, 0], sizes = [2, 128], strides = [1, 1]} : vector<2x512xf32> to vector<2x128xf32>
    %102 = arith.negf %101 : vector<2x128xf32>
    %103 = math.exp %102 : vector<2x128xf32>
    %cst_24 = arith.constant 1.000000e+00 : f32
    %104 = vector.broadcast %cst_24 : f32 to vector<2x128xf32>
    %105 = arith.addf %104, %103 : vector<2x128xf32>
    %106 = arith.divf %104, %105 : vector<2x128xf32>
    %107 = vector.extract_strided_slice %100 {offsets = [0, 128], sizes = [2, 128], strides = [1, 1]} : vector<2x512xf32> to vector<2x128xf32>
    %108 = arith.negf %107 : vector<2x128xf32>
    %109 = math.exp %108 : vector<2x128xf32>
    %cst_25 = arith.constant 1.000000e+00 : f32
    %110 = vector.broadcast %cst_25 : f32 to vector<2x128xf32>
    %111 = arith.addf %110, %109 : vector<2x128xf32>
    %112 = arith.divf %110, %111 : vector<2x128xf32>
    %113 = vector.extract_strided_slice %100 {offsets = [0, 256], sizes = [2, 128], strides = [1, 1]} : vector<2x512xf32> to vector<2x128xf32>
    %114 = math.tanh %113 : vector<2x128xf32>
    %115 = vector.extract_strided_slice %100 {offsets = [0, 384], sizes = [2, 128], strides = [1, 1]} : vector<2x512xf32> to vector<2x128xf32>
    %116 = arith.negf %115 : vector<2x128xf32>
    %117 = math.exp %116 : vector<2x128xf32>
    %cst_26 = arith.constant 1.000000e+00 : f32
    %118 = vector.broadcast %cst_26 : f32 to vector<2x128xf32>
    %119 = arith.addf %118, %117 : vector<2x128xf32>
    %120 = arith.divf %118, %119 : vector<2x128xf32>
    %121 = arith.mulf %112, %94 : vector<2x128xf32>
    %122 = arith.mulf %106, %114 : vector<2x128xf32>
    %123 = arith.addf %121, %122 : vector<2x128xf32>
    %124 = math.tanh %123 : vector<2x128xf32>
    %125 = arith.mulf %120, %124 : vector<2x128xf32>
    %126 = vector.extract_strided_slice %5 {offsets = [8, 0], sizes = [2, 512], strides = [1, 1]} : vector<16x512xf32> to vector<2x512xf32>
    %127 = arith.truncf %125 : vector<2x128xf32> to vector<2x128xbf16>
    %cst_27 = arith.constant dense<0.000000e+00> : vector<2x512xf32>
    %128 = tpu.matmul %127, %7, %cst_27 {dimension_numbers = #tpu.dot_dimension_numbers<[1], [0], [0], [1], [0, 0, 1, 1], [], []>} : vector<2x128xbf16>, vector<128x512xbf16>, vector<2x512xf32> -> vector<2x512xf32>
    %129 = arith.addf %126, %128 : vector<2x512xf32>
    %130 = vector.extract_strided_slice %129 {offsets = [0, 0], sizes = [2, 128], strides = [1, 1]} : vector<2x512xf32> to vector<2x128xf32>
    %131 = arith.negf %130 : vector<2x128xf32>
    %132 = math.exp %131 : vector<2x128xf32>
    %cst_28 = arith.constant 1.000000e+00 : f32
    %133 = vector.broadcast %cst_28 : f32 to vector<2x128xf32>
    %134 = arith.addf %133, %132 : vector<2x128xf32>
    %135 = arith.divf %133, %134 : vector<2x128xf32>
    %136 = vector.extract_strided_slice %129 {offsets = [0, 128], sizes = [2, 128], strides = [1, 1]} : vector<2x512xf32> to vector<2x128xf32>
    %137 = arith.negf %136 : vector<2x128xf32>
    %138 = math.exp %137 : vector<2x128xf32>
    %cst_29 = arith.constant 1.000000e+00 : f32
    %139 = vector.broadcast %cst_29 : f32 to vector<2x128xf32>
    %140 = arith.addf %139, %138 : vector<2x128xf32>
    %141 = arith.divf %139, %140 : vector<2x128xf32>
    %142 = vector.extract_strided_slice %129 {offsets = [0, 256], sizes = [2, 128], strides = [1, 1]} : vector<2x512xf32> to vector<2x128xf32>
    %143 = math.tanh %142 : vector<2x128xf32>
    %144 = vector.extract_strided_slice %129 {offsets = [0, 384], sizes = [2, 128], strides = [1, 1]} : vector<2x512xf32> to vector<2x128xf32>
    %145 = arith.negf %144 : vector<2x128xf32>
    %146 = math.exp %145 : vector<2x128xf32>
    %cst_30 = arith.constant 1.000000e+00 : f32
    %147 = vector.broadcast %cst_30 : f32 to vector<2x128xf32>
    %148 = arith.addf %147, %146 : vector<2x128xf32>
    %149 = arith.divf %147, %148 : vector<2x128xf32>
    %150 = arith.mulf %141, %123 : vector<2x128xf32>
    %151 = arith.mulf %135, %143 : vector<2x128xf32>
    %152 = arith.addf %150, %151 : vector<2x128xf32>
    %153 = math.tanh %152 : vector<2x128xf32>
    %154 = arith.mulf %149, %153 : vector<2x128xf32>
    %155 = vector.extract_strided_slice %5 {offsets = [10, 0], sizes = [2, 512], strides = [1, 1]} : vector<16x512xf32> to vector<2x512xf32>
    %156 = arith.truncf %154 : vector<2x128xf32> to vector<2x128xbf16>
    %cst_31 = arith.constant dense<0.000000e+00> : vector<2x512xf32>
    %157 = tpu.matmul %156, %7, %cst_31 {dimension_numbers = #tpu.dot_dimension_numbers<[1], [0], [0], [1], [0, 0, 1, 1], [], []>} : vector<2x128xbf16>, vector<128x512xbf16>, vector<2x512xf32> -> vector<2x512xf32>
    %158 = arith.addf %155, %157 : vector<2x512xf32>
    %159 = vector.extract_strided_slice %158 {offsets = [0, 0], sizes = [2, 128], strides = [1, 1]} : vector<2x512xf32> to vector<2x128xf32>
    %160 = arith.negf %159 : vector<2x128xf32>
    %161 = math.exp %160 : vector<2x128xf32>
    %cst_32 = arith.constant 1.000000e+00 : f32
    %162 = vector.broadcast %cst_32 : f32 to vector<2x128xf32>
    %163 = arith.addf %162, %161 : vector<2x128xf32>
    %164 = arith.divf %162, %163 : vector<2x128xf32>
    %165 = vector.extract_strided_slice %158 {offsets = [0, 128], sizes = [2, 128], strides = [1, 1]} : vector<2x512xf32> to vector<2x128xf32>
    %166 = arith.negf %165 : vector<2x128xf32>
    %167 = math.exp %166 : vector<2x128xf32>
    %cst_33 = arith.constant 1.000000e+00 : f32
    %168 = vector.broadcast %cst_33 : f32 to vector<2x128xf32>
    %169 = arith.addf %168, %167 : vector<2x128xf32>
    %170 = arith.divf %168, %169 : vector<2x128xf32>
    %171 = vector.extract_strided_slice %158 {offsets = [0, 256], sizes = [2, 128], strides = [1, 1]} : vector<2x512xf32> to vector<2x128xf32>
    %172 = math.tanh %171 : vector<2x128xf32>
    %173 = vector.extract_strided_slice %158 {offsets = [0, 384], sizes = [2, 128], strides = [1, 1]} : vector<2x512xf32> to vector<2x128xf32>
    %174 = arith.negf %173 : vector<2x128xf32>
    %175 = math.exp %174 : vector<2x128xf32>
    %cst_34 = arith.constant 1.000000e+00 : f32
    %176 = vector.broadcast %cst_34 : f32 to vector<2x128xf32>
    %177 = arith.addf %176, %175 : vector<2x128xf32>
    %178 = arith.divf %176, %177 : vector<2x128xf32>
    %179 = arith.mulf %170, %152 : vector<2x128xf32>
    %180 = arith.mulf %164, %172 : vector<2x128xf32>
    %181 = arith.addf %179, %180 : vector<2x128xf32>
    %182 = math.tanh %181 : vector<2x128xf32>
    %183 = arith.mulf %178, %182 : vector<2x128xf32>
    %184 = vector.extract_strided_slice %5 {offsets = [12, 0], sizes = [2, 512], strides = [1, 1]} : vector<16x512xf32> to vector<2x512xf32>
    %185 = arith.truncf %183 : vector<2x128xf32> to vector<2x128xbf16>
    %cst_35 = arith.constant dense<0.000000e+00> : vector<2x512xf32>
    %186 = tpu.matmul %185, %7, %cst_35 {dimension_numbers = #tpu.dot_dimension_numbers<[1], [0], [0], [1], [0, 0, 1, 1], [], []>} : vector<2x128xbf16>, vector<128x512xbf16>, vector<2x512xf32> -> vector<2x512xf32>
    %187 = arith.addf %184, %186 : vector<2x512xf32>
    %188 = vector.extract_strided_slice %187 {offsets = [0, 0], sizes = [2, 128], strides = [1, 1]} : vector<2x512xf32> to vector<2x128xf32>
    %189 = arith.negf %188 : vector<2x128xf32>
    %190 = math.exp %189 : vector<2x128xf32>
    %cst_36 = arith.constant 1.000000e+00 : f32
    %191 = vector.broadcast %cst_36 : f32 to vector<2x128xf32>
    %192 = arith.addf %191, %190 : vector<2x128xf32>
    %193 = arith.divf %191, %192 : vector<2x128xf32>
    %194 = vector.extract_strided_slice %187 {offsets = [0, 128], sizes = [2, 128], strides = [1, 1]} : vector<2x512xf32> to vector<2x128xf32>
    %195 = arith.negf %194 : vector<2x128xf32>
    %196 = math.exp %195 : vector<2x128xf32>
    %cst_37 = arith.constant 1.000000e+00 : f32
    %197 = vector.broadcast %cst_37 : f32 to vector<2x128xf32>
    %198 = arith.addf %197, %196 : vector<2x128xf32>
    %199 = arith.divf %197, %198 : vector<2x128xf32>
    %200 = vector.extract_strided_slice %187 {offsets = [0, 256], sizes = [2, 128], strides = [1, 1]} : vector<2x512xf32> to vector<2x128xf32>
    %201 = math.tanh %200 : vector<2x128xf32>
    %202 = vector.extract_strided_slice %187 {offsets = [0, 384], sizes = [2, 128], strides = [1, 1]} : vector<2x512xf32> to vector<2x128xf32>
    %203 = arith.negf %202 : vector<2x128xf32>
    %204 = math.exp %203 : vector<2x128xf32>
    %cst_38 = arith.constant 1.000000e+00 : f32
    %205 = vector.broadcast %cst_38 : f32 to vector<2x128xf32>
    %206 = arith.addf %205, %204 : vector<2x128xf32>
    %207 = arith.divf %205, %206 : vector<2x128xf32>
    %208 = arith.mulf %199, %181 : vector<2x128xf32>
    %209 = arith.mulf %193, %201 : vector<2x128xf32>
    %210 = arith.addf %208, %209 : vector<2x128xf32>
    %211 = math.tanh %210 : vector<2x128xf32>
    %212 = arith.mulf %207, %211 : vector<2x128xf32>
    %213 = vector.extract_strided_slice %5 {offsets = [14, 0], sizes = [2, 512], strides = [1, 1]} : vector<16x512xf32> to vector<2x512xf32>
    %214 = arith.truncf %212 : vector<2x128xf32> to vector<2x128xbf16>
    %cst_39 = arith.constant dense<0.000000e+00> : vector<2x512xf32>
    %215 = tpu.matmul %214, %7, %cst_39 {dimension_numbers = #tpu.dot_dimension_numbers<[1], [0], [0], [1], [0, 0, 1, 1], [], []>} : vector<2x128xbf16>, vector<128x512xbf16>, vector<2x512xf32> -> vector<2x512xf32>
    %216 = arith.addf %213, %215 : vector<2x512xf32>
    %217 = vector.extract_strided_slice %216 {offsets = [0, 0], sizes = [2, 128], strides = [1, 1]} : vector<2x512xf32> to vector<2x128xf32>
    %218 = arith.negf %217 : vector<2x128xf32>
    %219 = math.exp %218 : vector<2x128xf32>
    %cst_40 = arith.constant 1.000000e+00 : f32
    %220 = vector.broadcast %cst_40 : f32 to vector<2x128xf32>
    %221 = arith.addf %220, %219 : vector<2x128xf32>
    %222 = arith.divf %220, %221 : vector<2x128xf32>
    %223 = vector.extract_strided_slice %216 {offsets = [0, 128], sizes = [2, 128], strides = [1, 1]} : vector<2x512xf32> to vector<2x128xf32>
    %224 = arith.negf %223 : vector<2x128xf32>
    %225 = math.exp %224 : vector<2x128xf32>
    %cst_41 = arith.constant 1.000000e+00 : f32
    %226 = vector.broadcast %cst_41 : f32 to vector<2x128xf32>
    %227 = arith.addf %226, %225 : vector<2x128xf32>
    %228 = arith.divf %226, %227 : vector<2x128xf32>
    %229 = vector.extract_strided_slice %216 {offsets = [0, 256], sizes = [2, 128], strides = [1, 1]} : vector<2x512xf32> to vector<2x128xf32>
    %230 = math.tanh %229 : vector<2x128xf32>
    %231 = vector.extract_strided_slice %216 {offsets = [0, 384], sizes = [2, 128], strides = [1, 1]} : vector<2x512xf32> to vector<2x128xf32>
    %232 = arith.negf %231 : vector<2x128xf32>
    %233 = math.exp %232 : vector<2x128xf32>
    %cst_42 = arith.constant 1.000000e+00 : f32
    %234 = vector.broadcast %cst_42 : f32 to vector<2x128xf32>
    %235 = arith.addf %234, %233 : vector<2x128xf32>
    %236 = arith.divf %234, %235 : vector<2x128xf32>
    %237 = arith.mulf %228, %210 : vector<2x128xf32>
    %238 = arith.mulf %222, %230 : vector<2x128xf32>
    %239 = arith.addf %237, %238 : vector<2x128xf32>
    %240 = math.tanh %239 : vector<2x128xf32>
    %241 = arith.mulf %236, %240 : vector<2x128xf32>
    %242 = tpu.concatenate %38, %67, %96, %125, %154, %183, %212, %241 in 0 : vector<2x128xf32>, vector<2x128xf32>, vector<2x128xf32>, vector<2x128xf32>, vector<2x128xf32>, vector<2x128xf32>, vector<2x128xf32>, vector<2x128xf32> -> vector<16x128xf32>
    %cst_43 = arith.constant dense<0.000000e+00> : vector<128xf32>
    %243 = vector.multi_reduction <add>, %242, %cst_43 [0] : vector<16x128xf32> to vector<128xf32>
    %244 = vector.shape_cast %243 : vector<128xf32> to vector<1x128xf32>
    %245 = arith.mulf %242, %242 : vector<16x128xf32>
    %cst_44 = arith.constant dense<0.000000e+00> : vector<128xf32>
    %246 = vector.multi_reduction <add>, %245, %cst_44 [0] : vector<16x128xf32> to vector<128xf32>
    %247 = vector.shape_cast %246 : vector<128xf32> to vector<1x128xf32>
    %cst_45 = arith.constant 6.250000e-02 : f32
    %248 = vector.broadcast %cst_45 : f32 to vector<1x128xf32>
    %249 = arith.mulf %244, %248 : vector<1x128xf32>
    %cst_46 = arith.constant 6.250000e-02 : f32
    %250 = vector.broadcast %cst_46 : f32 to vector<1x128xf32>
    %251 = arith.mulf %247, %250 : vector<1x128xf32>
    %252 = arith.mulf %249, %249 : vector<1x128xf32>
    %253 = arith.subf %251, %252 : vector<1x128xf32>
    %c0_47 = arith.constant 0 : index
    %c0_48 = arith.constant 0 : index
    %254 = vector.load %arg6[%c0_47, %c0_48] : memref<1x128xf32, #tpu.memory_space<vmem>>, vector<1x128xf32>
    %cst_49 = arith.constant 9.99999974E-6 : f32
    %255 = vector.broadcast %cst_49 : f32 to vector<1x128xf32>
    %256 = arith.addf %253, %255 : vector<1x128xf32>
    %257 = math.rsqrt %256 : vector<1x128xf32>
    %258 = arith.mulf %254, %257 : vector<1x128xf32>
    %c0_50 = arith.constant 0 : index
    %c0_51 = arith.constant 0 : index
    %259 = vector.load %arg7[%c0_50, %c0_51] : memref<1x128xf32, #tpu.memory_space<vmem>>, vector<1x128xf32>
    %260 = arith.mulf %249, %258 : vector<1x128xf32>
    %261 = arith.subf %259, %260 : vector<1x128xf32>
    %262 = vector.broadcast %258 : vector<1x128xf32> to vector<16x128xf32>
    %263 = arith.mulf %242, %262 : vector<16x128xf32>
    %264 = vector.broadcast %261 : vector<1x128xf32> to vector<16x128xf32>
    %265 = arith.addf %263, %264 : vector<16x128xf32>
    %c0_52 = arith.constant 0 : index
    %c0_53 = arith.constant 0 : index
    %266 = vector.load %arg8[%c0_52, %c0_53] : memref<128x128xf32, #tpu.memory_space<vmem>>, vector<128x128xf32>
    %cst_54 = arith.constant dense<0.000000e+00> : vector<16x128xf32>
    %267 = tpu.matmul %265, %266, %cst_54 {dimension_numbers = #tpu.dot_dimension_numbers<[1], [0], [0], [1], [0, 0, 1, 1], [], []>} : vector<16x128xf32>, vector<128x128xf32>, vector<16x128xf32> -> vector<16x128xf32>
    %c0_55 = arith.constant 0 : index
    %c0_56 = arith.constant 0 : index
    %268 = vector.load %arg9[%c0_55, %c0_56] : memref<1x128xf32, #tpu.memory_space<vmem>>, vector<1x128xf32>
    %269 = vector.broadcast %268 : vector<1x128xf32> to vector<16x128xf32>
    %270 = arith.addf %267, %269 : vector<16x128xf32>
    %cst_57 = arith.constant dense<0xFF800000> : vector<16xf32>
    %271 = vector.multi_reduction <maximumf>, %270, %cst_57 [1] : vector<16x128xf32> to vector<16xf32>
    %272 = vector.shape_cast %271 : vector<16xf32> to vector<16x1xf32>
    %273 = vector.broadcast %272 : vector<16x1xf32> to vector<16x128xf32>
    %274 = arith.subf %270, %273 : vector<16x128xf32>
    %275 = math.exp %274 : vector<16x128xf32>
    %cst_58 = arith.constant dense<0.000000e+00> : vector<16xf32>
    %276 = vector.multi_reduction <add>, %275, %cst_58 [1] : vector<16x128xf32> to vector<16xf32>
    %277 = vector.shape_cast %276 : vector<16xf32> to vector<16x1xf32>
    %278 = math.log %277 : vector<16x1xf32>
    %279 = arith.addf %272, %278 : vector<16x1xf32>
    %280 = vector.broadcast %279 : vector<16x1xf32> to vector<16x128xf32>
    %281 = arith.subf %270, %280 : vector<16x128xf32>
    %c0_59 = arith.constant 0 : index
    %c0_60 = arith.constant 0 : index
    %282 = vector.load %arg10[%c0_59, %c0_60] : memref<16x128xf32, #tpu.memory_space<vmem>>, vector<16x128xf32>
    tpu.vector_store %arg10[%c0_59, %c0_60], %281 {strides = array<i32>} : memref<16x128xf32, #tpu.memory_space<vmem>>, vector<16x128xf32>,
    return
  }
}

</mosaic_0001>

<bundles_post_ra>
// kernel: batch_model_forward.1
= control target key start
LH: loop header
LB: loop body
LE: loop exit
PB: predicated region body
PF: predicated region fallthrough
CT: control target
= control target key end

     0   :  { %15 = vsyncpa [#allocation3], 0  ;;  %s2344_s0 = inlined_call_operand.vmem [shape: f32[16,35], index: 0, kind: input, shape index: {}]   ;;  %s2345_s1 = inlined_call_operand.vmem [shape: f32[2,128], index: 1, kind: input, shape index: {}]   ;;  %s2346_s2 = inlined_call_operand.vmem [shape: f32[2,128], index: 2, kind: input, shape index: {}]   ;;  %s2347_s3 = inlined_call_operand.hbm [shape: f32[35,512], index: 3, kind: input, shape index: {}]   ;;  %s2348_s4 = inlined_call_operand.hbm [shape: f32[128,512], index: 4, kind: input, shape index: {}]   ;;  %s2349_s5 = inlined_call_operand.vmem [shape: f32[1,512], index: 5, kind: input, shape index: {}]   ;;  %s2350_s6 = inlined_call_operand.vmem [shape: f32[1,128], index: 6, kind: input, shape index: {}]   ;;  %s2351_s7 = inlined_call_operand.vmem [shape: f32[1,128], index: 7, kind: input, shape index: {}]   ;;  %s2352_s8 = inlined_call_operand.hbm [shape: f32[128,128], index: 8, kind: input, shape index: {}]   ;;  %s2353_s9 = inlined_call_operand.vmem [shape: f32[1,128], index: 9, kind: input, shape index: {}]   ;;  %s2354_s10 = inlined_call_operand.vmem [shape: f32[16,128], index: 10, kind: output, shape index: {}]  }
   0x1   :  { %16 = vsyncpa [#allocation5], 0  ;;  %s40_s15 = sshll.u32 %s2348_s4, 4  ;;  %s1778_s16 = smov [#allocation4]   ;;  %s41_s15 = int_to_ptr.hbm [resolvable:$true] %s40_s15 }
   0x2   :  { %s42_s17 = sshll.u32 %s1778_s16, 4  ;;  %s27_s20 = sshll.u32 %s2347_s3, 4  ;;  %s43_s17 = int_to_ptr.vmem [resolvable:$true] %s42_s17  ;;  %s28_s20 = int_to_ptr.hbm [resolvable:$true] %s27_s20 }
   0x3   :  { %s1779_s21 = smov 512   ;;  %s1780_s22 = smov 32  }
   0x4   :  { %48 = dma.hbm_to_vmem [thread:$0]  %s41_s15, 8192, %s43_s17, [#allocation5], %s1779_s21, %s1779_s21, %s1780_s22  }
   0x5   :  { %s1781_s23 = smov [#allocation2]   ;;  %s59_s27 = sshll.u32 %s2352_s8, 4  ;;  %s60_s27 = int_to_ptr.hbm [resolvable:$true] %s59_s27 }
   0x6   :  { %s29_s24 = sshll.u32 %s1781_s23, 4  ;;  %s1782_s4 = smov [#allocation6]   ;;  %s30_s24 = int_to_ptr.vmem [resolvable:$true] %s29_s24 }
   0x7   :  { %35 = dma.hbm_to_vmem [thread:$0]  %s28_s20, 2560, %s30_s24, [#allocation3], %s1779_s21, %s1779_s21, %s1780_s22  }
   0x8   :  { %s61_s28 = sshll.u32 %s1782_s4, 4  ;;  %s1783_s29 = smov 128   ;;  %s62_s28 = int_to_ptr.vmem [resolvable:$true] %s61_s28 }
   0x9   :  { %s1784_s30 = smov 8  }
   0xa   :  { %67 = dma.hbm_to_vmem [thread:$0]  %s60_s27, 2048, %s62_s28, [#allocation5], %s1783_s29, %s1783_s29, %s1784_s30  }
   0xb   :  { %1774 = dma.done.wait [#allocation3], 2560  }
   0xc   :  { %1775 = vsyncadd [#allocation3], 4294964736 }
   0xd   :  { %1776 = dma.done.wait [#allocation5], 10240  }
   0xe   :  { %1777 = vsyncadd [#allocation5], 4294957056  ;;  %vm121_vm0 = vcmask 1042432   ;;  %v100_v0 = vld [vmem:[#allocation2 + $0x80] sm:$0x7]  ;;  %v99_v3 = vld [vmem:[#allocation2 + $0x78] sm:$0xff] }
   0xf   :  { %v103_v1 = vld [vmem:[#allocation2 + $0x98] sm:$0x7]  ;;  %v96_v2 = vld [vmem:[#allocation2 + $0x60] sm:$0xff]  ;;  %1520 = vmatpush.msk.msra.mxu1 %vm121_vm0, %v100_v0  ;;  %v102_v15 = vld [vmem:[#allocation2 + $0x90] sm:$0x7]  ;;  %vm114_vm1 = vcmask 285696  }
  0x10   :  { %1529 = vmatpush.msk.msra.mxu3 %vm121_vm0, %v103_v1  ;;  %v282_v4 = vld [vmem:[#allocation4 + $0x1c0] sm:$0xff]  ;;  %v95_v8 = vld [vmem:[#allocation2 + $0x58] sm:$0xff]  ;;  %1526 = vmatpush.msk.msra.mxu2 %vm121_vm0, %v102_v15  ;;  %v98_v20 = vld [vmem:[#allocation2 + $0x70] sm:$0xff] }
  0x11   :  { %v286_v5 = vld [vmem:[#allocation4 + $0x1e0] sm:$0xff]  ;;  %146 = vmatpush.msra.mxu1 %v96_v2  ;;  %v91_v12 = vld [vmem:[#allocation2 + $0x38] sm:$0xff]  ;;  %v101_v23 = vld [vmem:[#allocation2 + $0x88] sm:$0x7] }
  0x12   :  { %v1851_v6 = vpack.c.bf16 %v286_v5, %v282_v4  ;;  %v92_v7 = vld [vmem:[#allocation2 + $0x40] sm:$0xff]  ;;  %215 = vmatpush.msra.mxu3 %v99_v3  ;;  %v87_v16 = vld [vmem:[#allocation2 + $0x18] sm:$0xff]  ;;  %192 = vmatpush.msra.mxu2 %v98_v20  ;;  %v94_v25 = vld [vmem:[#allocation2 + $0x50] sm:$0xff] }
  0x13   :  { %v88_v9 = vld [vmem:[#allocation2 + $0x20] sm:$0xff]  ;;  %147 = vmatpush.msra.mxu1 %v92_v7  ;;  %v285_v17 = vld [vmem:[#allocation4 + $0x1d8] sm:$0xff]  ;;  %v97_v28 = vld [vmem:[#allocation2 + $0x68] sm:$0xff] }
  0x14   :  { %v274_v10 = vld [vmem:[#allocation4 + $0x180] sm:$0xff]  ;;  %325 = vmatpush.bf16.msra.mxu0 %v1851_v6  ;;  %216 = vmatpush.msra.mxu3 %v95_v8  ;;  %v289_v18 = vld [vmem:[#allocation4 + $0x1f8] sm:$0xff]  ;;  %v93_v31 = vld [vmem:[#allocation2 + $0x48] sm:$0xff] }
  0x15   :  { %v278_v11 = vld [vmem:[#allocation4 + $0x1a0] sm:$0xff]  ;;  %v1857_v19 = vpack.c.bf16 %v289_v18, %v285_v17  ;;  %148 = vmatpush.msra.mxu1 %v88_v9  ;;  %v277_v26 = vld [vmem:[#allocation4 + $0x198] sm:$0xff]  ;;  %v90_v33 = vld [vmem:[#allocation2 + $0x30] sm:$0xff]  ;;  %193 = vmatpush.msra.mxu2 %v94_v25 }
  0x16   :  { %v1854_v13 = vpack.c.bf16 %v278_v11, %v274_v10  ;;  %v84_v14 = vld [vmem:[#allocation2] sm:$0xff]  ;;  %217 = vmatpush.msra.mxu3 %v91_v12  ;;  %v281_v27 = vld [vmem:[#allocation4 + $0x1b8] sm:$0xff]  ;;  %v89_v35 = vld [vmem:[#allocation2 + $0x28] sm:$0xff] }
  0x17   :  { %v266_v21 = vld [vmem:[#allocation4 + $0x140] sm:$0xff]  ;;  %149 = vmatpush.msra.mxu1 %v84_v14  ;;  %v1864_v32 = vpack.c.bf16 %v281_v27, %v277_v26  ;;  %v284_v36 = vld [vmem:[#allocation4 + $0x1d0] sm:$0xff]  ;;  %v269_v38 = vld [vmem:[#allocation4 + $0x158] sm:$0xff]  ;;  %194 = vmatpush.msra.mxu2 %v90_v33 }
  0x18   :  { %v270_v22 = vld [vmem:[#allocation4 + $0x160] sm:$0xff]  ;;  %326 = vmatpush.bf16.msra.mxu0 %v1854_v13  ;;  %218 = vmatpush.msra.mxu3 %v87_v16  ;;  %v288_v37 = vld [vmem:[#allocation4 + $0x1f0] sm:$0xff]  ;;  %v273_v41 = vld [vmem:[#allocation4 + $0x178] sm:$0xff] }
  0x19   :  { %v1860_v24 = vpack.c.bf16 %v270_v22, %v266_v21  ;;  %v258_v29 = vld [vmem:[#allocation4 + $0x100] sm:$0xff]  ;;  %1523 = vmatpush.msk.msrb.mxu1 %vm121_vm0, %v101_v23  ;;  %v86_v40 = vld [vmem:[#allocation2 + $0x10] sm:$0xff]  ;;  %v1876_v43 = vpack.c.bf16 %v288_v37, %v284_v36  ;;  %v283_v45 = vld [vmem:[#allocation4 + $0x1c8] sm:$0xff]  ;;  %v1881_v47 = vpack.c.bf16 %v273_v41, %v269_v38 }
  0x1a   :  { %v262_v30 = vld [vmem:[#allocation4 + $0x120] sm:$0xff]  ;;  %364 = vmatpush.bf16.msrb.mxu3 %v1857_v19  ;;  %v287_v46 = vld [vmem:[#allocation4 + $0x1e8] sm:$0xff]  ;;  %v276_v48 = vld [vmem:[#allocation4 + $0x190] sm:$0xff]  ;;  %195 = vmatpush.msra.mxu2 %v86_v40 }
  0x1b   :  { %v1869_v34 = vld [vmem:[%s2344_s0] sm:$0xff]  ;;  %169 = vmatpush.msrb.mxu1 %v97_v28  ;;  %v1874_v39 = vpack.c.bf16 %v262_v30, %v258_v29  ;;  %v280_v49 = vld [vmem:[#allocation4 + $0x1b0] sm:$0xff]  ;;  %v85_v50 = vld [vmem:[#allocation2 + $0x8] sm:$0xff]  ;;  %v1883_v51 = vpack.c.bf16 %v287_v46, %v283_v45 }
  0x1c   :  { %1521 = vmatmul.msk.f32.vlgmr.msra.gmra.mxu1 %vm114_vm1, %v1869_v34  ;;  %327 = vmatpush.bf16.msra.mxu0 %v1860_v24  ;;  %v250_v42 = vld [vmem:[#allocation4 + $0xc0] sm:$0xff]  ;;  %v261_v52 = vld [vmem:[#allocation4 + $0x118] sm:$0xff]  ;;  %v275_v55 = vld [vmem:[#allocation4 + $0x188] sm:$0xff]  ;;  %v1889_v57 = vpack.c.bf16 %v280_v49, %v276_v48 }
  0x1d   :  { %v254_v44 = vld [vmem:[#allocation4 + $0xe0] sm:$0xff]  ;;  %1530 = vmatmul.msk.f32.vlgmr.msra.gmra.mxu3 %vm114_vm1, %v1869_v34  ;;  %170 = vmatpush.msrb.mxu1 %v93_v31  ;;  %v265_v53 = vld [vmem:[#allocation4 + $0x138] sm:$0xff]  ;;  %v279_v56 = vld [vmem:[#allocation4 + $0x1a8] sm:$0xff] }
  0x1e   :  { %365 = vmatpush.bf16.msrb.mxu3 %v1864_v32  ;;  %v1886_v54 = vpack.c.bf16 %v254_v44, %v250_v42  ;;  %351 = vmatpush.bf16.msrb.mxu2 %v1876_v43  ;;  %v242_v58 = vld [vmem:[#allocation4 + $0x80] sm:$0xff]  ;;  %v1894_v60 = vld [vmem:[%s2344_s0 + $0x8] sm:$0xff]  ;;  %v1897_v61 = vpack.c.bf16 %v265_v53, %v261_v52  ;;  %v268_v62 = vld [vmem:[#allocation4 + $0x150] sm:$0xff]  ;;  %v1900_v0 = vpack.c.bf16 %v279_v56, %v275_v55 }
  0x1f   :  { %171 = vmatpush.msrb.mxu1 %v89_v35  ;;  %v246_v59 = vld [vmem:[#allocation4 + $0xa0] sm:$0xff]  ;;  %v272_v63 = vld [vmem:[#allocation4 + $0x170] sm:$0xff]  ;;  %v253_v1 = vld [vmem:[#allocation4 + $0xd8] sm:$0xff]  ;;  %1527 = vmatmul.msk.f32.vlgmr.msra.gmra.mxu2 %vm114_vm1, %v1869_v34 }
  0x20   :  { %328 = vmatpush.bf16.msra.mxu0 %v1874_v39  ;;  %v257_v2 = vld [vmem:[#allocation4 + $0xf8] sm:$0xff]  ;;  %v1905_v3 = vpack.c.bf16 %v246_v59, %v242_v58  ;;  %v267_v4 = vld [vmem:[#allocation4 + $0x148] sm:$0xff]  ;;  %v1910_v7 = vpack.c.bf16 %v272_v63, %v268_v62  ;;  %v234_v8 = vld [vmem:[#allocation4 + $0x40] sm:$0xff] }
  0x21   :  { %172 = vmatpush.msrb.mxu1 %v85_v50  ;;  %v271_v5 = vld [vmem:[#allocation4 + $0x168] sm:$0xff]  ;;  %v238_v9 = vld [vmem:[#allocation4 + $0x60] sm:$0xff]  ;;  %v1915_v10 = vpack.c.bf16 %v257_v2, %v253_v1  ;;  %v260_v11 = vld [vmem:[#allocation4 + $0x110] sm:$0xff] }
  0x22   :  { %366 = vmatpush.bf16.msrb.mxu3 %v1881_v47  ;;  %352 = vmatpush.bf16.msrb.mxu2 %v1889_v57  ;;  %v264_v12 = vld [vmem:[#allocation4 + $0x130] sm:$0xff]  ;;  %v1918_v14 = vpack.c.bf16 %v271_v5, %v267_v4  ;;  %v245_v15 = vld [vmem:[#allocation4 + $0x98] sm:$0xff]  ;;  %v1921_v17 = vpack.c.bf16 %v238_v9, %v234_v8  ;;  %v259_v18 = vld [vmem:[#allocation4 + $0x108] sm:$0xff] }
  0x23   :  { %338 = vmatpush.bf16.msra.mxu1 %v1883_v51  ;;  %v249_v16 = vld [vmem:[#allocation4 + $0xb8] sm:$0xff]  ;;  %v263_v20 = vld [vmem:[#allocation4 + $0x128] sm:$0xff]  ;;  %v1924_v21 = vpack.c.bf16 %v264_v12, %v260_v11  ;;  %v226_v22 = vld [vmem:[#allocation4] sm:$0xff] }
  0x24   :  { %329 = vmatpush.bf16.msra.mxu0 %v1886_v54  ;;  %1522 = vmatmul.msk.f32.gmra.mxu1 %vm114_vm1, %v1894_v60  ;;  %v230_v23 = vld [vmem:[#allocation4 + $0x20] sm:$0xff]  ;;  %v1927_v25 = vpack.c.bf16 %v249_v16, %v245_v15  ;;  %v252_v26 = vld [vmem:[#allocation4 + $0xd0] sm:$0xff]  ;;  %v1930_v28 = vpack.c.bf16 %v263_v20, %v259_v18  ;;  %v237_v29 = vld [vmem:[#allocation4 + $0x58] sm:$0xff] }
  0x25   :  { %1531 = vmatmul.msk.f32.gmra.mxu3 %vm114_vm1, %v1894_v60  ;;  %v256_v27 = vld [vmem:[#allocation4 + $0xf0] sm:$0xff]  ;;  %v241_v30 = vld [vmem:[#allocation4 + $0x78] sm:$0xff]  ;;  %v1935_v31 = vpack.c.bf16 %v230_v23, %v226_v22  ;;  %v322_v33 = vld [vmem:[%s2345_s1] sm:$0x3] }
  0x26   :  { %367 = vmatpush.bf16.msrb.mxu3 %v1897_v61  ;;  %353 = vmatpush.bf16.msrb.mxu2 %v1910_v7  ;;  %v251_v35 = vld [vmem:[#allocation4 + $0xc8] sm:$0xff]  ;;  %v1943_v37 = vpack.c.bf16 %v256_v27, %v252_v26  ;;  %v1946_v38 = vpack.c.bf16 %v241_v30, %v237_v29  ;;  %v244_v40 = vld [vmem:[#allocation4 + $0x90] sm:$0xff]  ;;  %v324_v42 = vpack.c.bf16 %v322_v33, %v322_v33  ;;  %v229_v44 = vld [vmem:[#allocation4 + $0x18] sm:$0xff] }
  0x27   :  { %339 = vmatpush.bf16.msra.mxu1 %v1900_v0  ;;  %1528 = vmatmul.msk.f32.gmra.mxu2 %vm114_vm1, %v1894_v60  ;;  %v255_v36 = vld [vmem:[#allocation4 + $0xe8] sm:$0xff]  ;;  %v248_v41 = vld [vmem:[#allocation4 + $0xb0] sm:$0xff]  ;;  %v233_v45 = vld [vmem:[#allocation4 + $0x38] sm:$0xff] }
  0x28   :  { %330 = vmatpush.bf16.msra.mxu0 %v1905_v3  ;;  %v243_v46 = vld [vmem:[#allocation4 + $0x88] sm:$0xff]  ;;  %v1953_v49 = vpack.c.bf16 %v248_v41, %v244_v40  ;;  %v1957_v50 = vpack.c.bf16 %v233_v45, %v229_v44  ;;  %v236_v52 = vld [vmem:[#allocation4 + $0x50] sm:$0xff]  ;;  %v104_v9 = vld [vmem:[%s2349_s5] sm:$0xf] }
  0x29   :  { %v247_v48 = vld [vmem:[#allocation4 + $0xa8] sm:$0xff]  ;;  %v240_v53 = vld [vmem:[#allocation4 + $0x70] sm:$0xff]  ;;  %v106_v11 = vperm.slane %v104_v9, 0  ;;  %v109_v20 = vperm.slane %v104_v9, 3  ;;  %v108_v27 = vperm.slane %v104_v9, 2 }
  0x2a   :  { %368 = vmatpush.bf16.msrb.mxu3 %v1915_v10  ;;  %354 = vmatpush.bf16.msrb.mxu2 %v1924_v21  ;;  %v1960_v55 = vpack.c.bf16 %v247_v48, %v243_v46  ;;  %v235_v56 = vld [vmem:[#allocation4 + $0x48] sm:$0xff]  ;;  %v1965_v59 = vpack.c.bf16 %v240_v53, %v236_v52  ;;  %v228_v62 = vld [vmem:[#allocation4 + $0x10] sm:$0xff] }
  0x2b   :  { %340 = vmatpush.bf16.msra.mxu1 %v1918_v14  ;;  %v239_v58 = vld [vmem:[#allocation4 + $0x68] sm:$0xff]  ;;  %v232_v63 = vld [vmem:[#allocation4 + $0x30] sm:$0xff] }
  0x2c   :  { %331 = vmatpush.bf16.msra.mxu0 %v1921_v17  ;;  %1524 = vmatmul.msk.f32.vlgmr.msrb.gmra.mxu1 %vm114_vm1, %v1869_v34  ;;  %v1949_v34 = vpack.c.bf16 %v255_v36, %v251_v35  ;;  %v1970_v1 = vpack.c.bf16 %v239_v58, %v235_v56  ;;  %v227_v2 = vld [vmem:[#allocation4 + $0x8] sm:$0xff]  ;;  %v1974_v4 = vpack.c.bf16 %v232_v63, %v228_v62  ;;  %v107_v35 = vperm.slane %v104_v9, 1 }
  0x2e   :  { %369 = vmatpush.bf16.msrb.mxu3 %v1927_v25  ;;  %355 = vmatpush.bf16.msrb.mxu2 %v1943_v37 }
  0x2f   :  { %341 = vmatpush.bf16.msra.mxu1 %v1930_v28 }
  0x30   :  { %332 = vmatpush.bf16.msra.mxu0 %v1935_v31 }
  0x32   :  { %370 = vmatpush.bf16.msrb.mxu3 %v1946_v38  ;;  %356 = vmatpush.bf16.msrb.mxu2 %v1953_v49 }
  0x33   :  { %333 = vmatmul.bf16.vlgmr.msra.gmra.mxu0 %v324_v42  ;;  %342 = vmatpush.bf16.msra.mxu1 %v1949_v34 }
  0x34   :  { %445 = vmatpush.bf16.msrb.mxu0 %v1851_v6  ;;  %1525 = vmatmul.msk.f32.gmra.mxu1 %vm114_vm1, %v1894_v60  ;;  %v231_v60 = vld [vmem:[#allocation4 + $0x28] sm:$0xff] }
  0x35   :  { %v1978_v5 = vpack.c.bf16 %v231_v60, %v227_v2 }
  0x36   :  { %371 = vmatpush.bf16.msrb.mxu3 %v1957_v50  ;;  %357 = vmatpush.bf16.msrb.mxu2 %v1965_v59 }
  0x37   :  { %343 = vmatpush.bf16.msra.mxu1 %v1960_v55 }
  0x38   :  { %446 = vmatpush.bf16.msrb.mxu0 %v1854_v13 }
  0x39   :  { %372 = vmatmul.bf16.vlgmr.msrb.gmra.mxu3 %v324_v42 }
  0x3a   :  { %484 = vmatpush.bf16.msra.mxu3 %v1857_v19  ;;  %358 = vmatpush.bf16.msrb.mxu2 %v1974_v4 }
  0x3b   :  { %344 = vmatpush.bf16.msra.mxu1 %v1970_v1 }
  0x3c   :  { %447 = vmatpush.bf16.msrb.mxu0 %v1860_v24 }
  0x3d   :  { %359 = vmatmul.bf16.vlgmr.msrb.gmra.mxu2 %v324_v42 }
  0x3e   :  { %485 = vmatpush.bf16.msra.mxu3 %v1864_v32  ;;  %471 = vmatpush.bf16.msra.mxu2 %v1876_v43 }
  0x3f   :  { %345 = vmatpush.bf16.msra.mxu1 %v1978_v5 }
  0x40   :  { %448 = vmatpush.bf16.msrb.mxu0 %v1874_v39 }
  0x42   :  { %486 = vmatpush.bf16.msra.mxu3 %v1881_v47  ;;  %346 = vmatmul.bf16.vlgmr.msra.gmra.mxu1 %v324_v42 }
  0x43   :  { %458 = vmatpush.bf16.msrb.mxu1 %v1883_v51  ;;  %472 = vmatpush.bf16.msra.mxu2 %v1889_v57 }
  0x44   :  { %449 = vmatpush.bf16.msrb.mxu0 %v1886_v54 }
  0x46   :  { %487 = vmatpush.bf16.msra.mxu3 %v1897_v61 }
  0x47   :  { %459 = vmatpush.bf16.msrb.mxu1 %v1900_v0  ;;  %473 = vmatpush.bf16.msra.mxu2 %v1910_v7 }
  0x48   :  { %450 = vmatpush.bf16.msrb.mxu0 %v1905_v3 }
  0x4a   :  { %488 = vmatpush.bf16.msra.mxu3 %v1915_v10 }
  0x4b   :  { %460 = vmatpush.bf16.msrb.mxu1 %v1918_v14  ;;  %474 = vmatpush.bf16.msra.mxu2 %v1924_v21 }
  0x4c   :  { %451 = vmatpush.bf16.msrb.mxu0 %v1921_v17 }
  0x4e   :  { %489 = vmatpush.bf16.msra.mxu3 %v1927_v25 }
  0x4f   :  { %461 = vmatpush.bf16.msrb.mxu1 %v1930_v28  ;;  %475 = vmatpush.bf16.msra.mxu2 %v1943_v37 }
  0x50   :  { %452 = vmatpush.bf16.msrb.mxu0 %v1935_v31 }
  0x52   :  { %490 = vmatpush.bf16.msra.mxu3 %v1946_v38 }
  0x53   :  { %462 = vmatpush.bf16.msrb.mxu1 %v1949_v34  ;;  %476 = vmatpush.bf16.msra.mxu2 %v1953_v49 }
  0x54   :  { %583 = vmatpush.bf16.msra.mxu0 %v1851_v6 }
  0x56   :  { %491 = vmatpush.bf16.msra.mxu3 %v1957_v50 }
  0x57   :  { %463 = vmatpush.bf16.msrb.mxu1 %v1960_v55  ;;  %477 = vmatpush.bf16.msra.mxu2 %v1965_v59 }
  0x58   :  { %584 = vmatpush.bf16.msra.mxu0 %v1854_v13 }
  0x5a   :  { %622 = vmatpush.bf16.msrb.mxu3 %v1857_v19 }
  0x5b   :  { %464 = vmatpush.bf16.msrb.mxu1 %v1970_v1  ;;  %478 = vmatpush.bf16.msra.mxu2 %v1974_v4 }
  0x5c   :  { %585 = vmatpush.bf16.msra.mxu0 %v1860_v24 }
  0x5e   :  { %623 = vmatpush.bf16.msrb.mxu3 %v1864_v32 }
  0x5f   :  { %609 = vmatpush.bf16.msrb.mxu2 %v1876_v43  ;;  %465 = vmatpush.bf16.msrb.mxu1 %v1978_v5 }
  0x60   :  { %586 = vmatpush.bf16.msra.mxu0 %v1874_v39 }
  0x62   :  { %624 = vmatpush.bf16.msrb.mxu3 %v1881_v47 }
  0x63   :  { %596 = vmatpush.bf16.msra.mxu1 %v1883_v51  ;;  %610 = vmatpush.bf16.msrb.mxu2 %v1889_v57 }
  0x64   :  { %587 = vmatpush.bf16.msra.mxu0 %v1886_v54 }
  0x66   :  { %625 = vmatpush.bf16.msrb.mxu3 %v1897_v61 }
  0x67   :  { %597 = vmatpush.bf16.msra.mxu1 %v1900_v0  ;;  %611 = vmatpush.bf16.msrb.mxu2 %v1910_v7 }
  0x68   :  { %588 = vmatpush.bf16.msra.mxu0 %v1905_v3 }
  0x6a   :  { %626 = vmatpush.bf16.msrb.mxu3 %v1915_v10 }
  0x6b   :  { %598 = vmatpush.bf16.msra.mxu1 %v1918_v14  ;;  %612 = vmatpush.bf16.msrb.mxu2 %v1924_v21 }
  0x6c   :  { %589 = vmatpush.bf16.msra.mxu0 %v1921_v17 }
  0x6e   :  { %627 = vmatpush.bf16.msrb.mxu3 %v1927_v25 }
  0x6f   :  { %599 = vmatpush.bf16.msra.mxu1 %v1930_v28  ;;  %613 = vmatpush.bf16.msrb.mxu2 %v1943_v37 }
  0x70   :  { %590 = vmatpush.bf16.msra.mxu0 %v1935_v31 }
  0x72   :  { %628 = vmatpush.bf16.msrb.mxu3 %v1946_v38 }
  0x73   :  { %600 = vmatpush.bf16.msra.mxu1 %v1949_v34  ;;  %614 = vmatpush.bf16.msrb.mxu2 %v1953_v49 }
  0x76   :  { %629 = vmatpush.bf16.msrb.mxu3 %v1957_v50 }
  0x77   :  { %601 = vmatpush.bf16.msra.mxu1 %v1960_v55  ;;  %615 = vmatpush.bf16.msrb.mxu2 %v1965_v59 }
  0x7b   :  { %602 = vmatpush.bf16.msra.mxu1 %v1970_v1  ;;  %616 = vmatpush.bf16.msrb.mxu2 %v1974_v4 }
  0x7f   :  { %603 = vmatpush.bf16.msra.mxu1 %v1978_v5 }
  0x99   :  { %v151_v8 = vpop.f32.mrf.mxu1 }
  0x9a   :  { %v2049_v30 = vadd.f32 %v151_v8, %v106_v11 }
  0xa0   :  { %v220_v12 = vpop.f32.mrf.mxu3 }
  0xa1   :  { %v154_v15 = vpop.f32.mrf.mxu1  ;;  %v2056_v46 = vadd.f32 %v220_v12, %v109_v20 }
  0xa2   :  { %v2045_v16 = vadd.f32 %v154_v15, %v106_v11  ;;  %v197_v18 = vpop.f32.mrf.mxu2 }
  0xa4   :  { %2359 = vst [vmem:[#allocation9_spill] sm:$0xff] %v2045_v16 }
  0xa8   :  { %v223_v22 = vpop.f32.mrf.mxu3 }
  0xa9   :  { %v174_v23 = vpop.f32.mrf.mxu1  ;;  %v2047_v26 = vadd.f32 %v223_v22, %v109_v20 }
  0xaa   :  { %v200_v29 = vpop.f32.mrf.mxu2  ;;  %v2059_v58 = vadd.f32 %v174_v23, %v107_v35 }
  0xab   :  { %2360 = vst [vmem:[#allocation10_spill] sm:$0xff] %v2047_v26  ;;  %v2051_v33 = vadd.f32 %v200_v29, %v108_v27 }
  0xad   :  { %2361 = vst [vmem:[#allocation11_spill] sm:$0xff] %v2051_v33 }
  0xb0   :  { %v334_v36 = vpop.f32.mrf.mxu0 }
  0xb1   :  { %v377_v40 = vadd.f32 %v334_v36, %v2049_v30  ;;  %v177_v41 = vpop.f32.mrf.mxu1 }
  0xb2   :  { %v2054_v42 = vadd.f32 %v177_v41, %v107_v35  ;;  %v2062_v35 = vadd.f32 %v197_v18, %v108_v27 }
  0xb3   :  { %v1532_v44 = vmul.f32 -1.442695, %v377_v40 }
  0xb4   :  { %2362 = vst [vmem:[#allocation12_spill] sm:$0xff] %v2054_v42 }
  0xb5   :  { %1564 = vpow2.f32 %v1532_v44 }
  0xb8   :  { %v336_v45 = vpop.f32.mrf.mxu0 }
  0xbb   :  { %v1565_v48 = vpop.eup %1564 }
  0xbc   :  { %v384_v52 = vadd.f32 1.0, %v1565_v48  ;;  %v373_v53 = vpop.f32.mrf.mxu3 }
  0xbd   :  { %v380_v56 = vadd.f32 %v373_v53, %v2056_v46 }
  0xbe   :  { %1566 = vrcp.f32 %v384_v52  ;;  %vm390_vm3 = vweird.f32 %v384_v52 }
  0xbf   :  { %v1534_v62 = vmul.f32 -1.442695, %v380_v56  ;;  %v347_v63 = vpop.f32.mrf.mxu1 }
  0xc0   :  { %v378_v2 = vadd.f32 %v347_v63, %v2059_v58  ;;  %v360_v8 = vpop.f32.mrf.mxu2  ;;  %v396_v63 = vand.u32 2147483648, %v384_v52 }
  0xc1   :  { %1568 = vpow2.f32 %v1534_v62  ;;  %v379_v44 = vadd.f32 %v360_v8, %v2062_v35 }
  0xc2   :  { %v1533_v60 = vmul.f32 -1.442695, %v378_v2 }
  0xc4   :  { %1570 = vpow2.f32 %v1533_v60  ;;  %v375_v9 = vpop.f32.mrf.mxu3  ;;  %v1567_v11 = vpop.eup %1566  ;;  %v394_v60 = vand.u32 2147483647, %v384_v52 }
  0xc5   :  { %v386_v20 = vmul.f32 %v1567_v11, %v384_v52  ;;  %vm391_vm2 = vweird.f32 %v1567_v11 }
  0xc6   :  { %vm392_vm4 = vmor %vm390_vm3, %vm391_vm2  ;;  %vm395_vm7 = vcmp.eq.f32.partialorder %v394_v60, 8.507059e+37 }
  0xc7   :  { %v1569_v12 = vpop.eup %1568  ;;  %v349_v15 = vpop.f32.mrf.mxu1  ;;  %v387_v23 = vsub.f32 1.0, %v386_v20  ;;  %v397_v20 = vor.u32 1.1754944e-38, %v396_v63 }
  0xc8   :  { %v423_v22 = vadd.f32 1.0, %v1569_v12  ;;  %v362_v40 = vpop.f32.mrf.mxu2 }
  0xc9   :  { %v388_v41 = vmul.f32 %v1567_v11, %v387_v23  ;;  %v323_v23 = vld [vmem:[%s2346_s2] sm:$0x3] }
  0xca   :  { %v1571_v29 = vpop.eup %1570  ;;  %1572 = vrcp.f32 %v423_v22  ;;  %vm429_vm11 = vweird.f32 %v423_v22  ;;  %v433_v63 = vand.u32 2147483647, %v423_v22 }
  0xcb   :  { %v403_v36 = vadd.f32 1.0, %v1571_v29  ;;  %v389_v56 = vadd.f32 %v1567_v11, %v388_v41 }
  0xcc   :  { %vm434_vm13 = vcmp.eq.f32.partialorder %v433_v63, 8.507059e+37 }
  0xcd   :  { %1574 = vrcp.f32 %v403_v36  ;;  %v415_v9 = vand.u32 2147483648, %v403_v36  ;;  %v393_v18 = vsel %vm392_vm4, %v1567_v11, %v389_v56  ;;  %v413_v27 = vand.u32 2147483647, %v403_v36 }
  0xce   :  { %1576 = vtanh.f32 %v379_v44  ;;  %vm409_vm6 = vweird.f32 %v403_v36  ;;  %v398_v41 = vsel %vm395_vm7, %v397_v20, %v393_v18 }
  0xcf   :  { %v416_v40 = vor.u32 1.1754944e-38, %v415_v9  ;;  %vm414_vm9 = vcmp.eq.f32.partialorder %v413_v27, 8.507059e+37 }
  0xd0   :  { %v1573_v45 = vpop.eup %1572 }
  0xd1   :  { %v425_v62 = vmul.f32 %v1573_v45, %v423_v22  ;;  %vm430_vm10 = vweird.f32 %v1573_v45 }
  0xd2   :  { %vm431_vm12 = vmor %vm429_vm11, %vm430_vm10 }
  0xd3   :  { %v1575_v48 = vpop.eup %1574  ;;  %v426_v15 = vsub.f32 1.0, %v425_v62 }
  0xd4   :  { %v405_v53 = vmul.f32 %v1575_v48, %v403_v36  ;;  %vm410_vm5 = vweird.f32 %v1575_v48  ;;  %v1577_v29 = vpop.eup %1576  ;;  %v435_v36 = vand.u32 2147483648, %v423_v22 }
  0xd5   :  { %vm411_vm8 = vmor %vm409_vm6, %vm410_vm5  ;;  %v427_v44 = vmul.f32 %v1573_v45, %v426_v15  ;;  %v440_v11 = vmul.f32 %v1577_v29, %v398_v41 }
  0xd6   :  { %v406_v2 = vsub.f32 1.0, %v405_v53  ;;  %v436_v9 = vor.u32 1.1754944e-38, %v435_v36 }
  0xd7   :  { %v428_v62 = vadd.f32 %v1573_v45, %v427_v44 }
  0xd8   :  { %v407_v12 = vmul.f32 %v1575_v48, %v406_v2 }
  0xd9   :  { %v432_v60 = vsel %vm431_vm12, %v1573_v45, %v428_v62 }
  0xda   :  { %v408_v8 = vadd.f32 %v1575_v48, %v407_v12 }
  0xdc   :  { %v412_v52 = vsel %vm411_vm8, %v1575_v48, %v408_v8  ;;  %v437_v48 = vsel %vm434_vm13, %v436_v9, %v432_v60 }
  0xdd   :  { %v417_v53 = vsel %vm414_vm9, %v416_v40, %v412_v52 }
  0xde   :  { %v439_v2 = vmul.f32 %v417_v53, %v323_v23 }
  0xe0   :  { %v2068_v56 = vadd.f32 %v440_v11, %v439_v2 }
  0xe2   :  { %1578 = vtanh.f32 %v2068_v56 }
  0xe8   :  { %v1579_v12 = vpop.eup %1578 }
  0xe9   :  { %v2071_v18 = vmul.f32 %v1579_v12, %v437_v48 }
  0xeb   :  { %v444_v27 = vpack.c.bf16 %v2071_v18, %v2071_v18 }
  0xed   :  { %453 = vmatmul.bf16.vlgmr.msrb.gmra.mxu0 %v444_v27  ;;  %466 = vmatmul.bf16.vlgmr.msrb.gmra.mxu1 %v444_v27 }
  0xee   :  { %479 = vmatmul.bf16.vlgmr.msra.gmra.mxu2 %v444_v27  ;;  %492 = vmatmul.bf16.vlgmr.msra.gmra.mxu3 %v444_v27 }
  0xef   :  { %721 = vmatpush.bf16.msrb.mxu0 %v1851_v6  ;;  %734 = vmatpush.bf16.msrb.mxu1 %v1883_v51 }
  0xf0   :  { %747 = vmatpush.bf16.msra.mxu2 %v1876_v43  ;;  %760 = vmatpush.bf16.msra.mxu3 %v1857_v19 }
  0xf3   :  { %722 = vmatpush.bf16.msrb.mxu0 %v1854_v13  ;;  %735 = vmatpush.bf16.msrb.mxu1 %v1900_v0 }
  0xf4   :  { %748 = vmatpush.bf16.msra.mxu2 %v1889_v57  ;;  %761 = vmatpush.bf16.msra.mxu3 %v1864_v32 }
  0xf7   :  { %723 = vmatpush.bf16.msrb.mxu0 %v1860_v24  ;;  %736 = vmatpush.bf16.msrb.mxu1 %v1918_v14 }
  0xf8   :  { %749 = vmatpush.bf16.msra.mxu2 %v1910_v7  ;;  %762 = vmatpush.bf16.msra.mxu3 %v1881_v47 }
  0xfb   :  { %724 = vmatpush.bf16.msrb.mxu0 %v1874_v39  ;;  %737 = vmatpush.bf16.msrb.mxu1 %v1930_v28 }
  0xfc   :  { %750 = vmatpush.bf16.msra.mxu2 %v1924_v21  ;;  %763 = vmatpush.bf16.msra.mxu3 %v1897_v61 }
  0xff   :  { %725 = vmatpush.bf16.msrb.mxu0 %v1886_v54  ;;  %738 = vmatpush.bf16.msrb.mxu1 %v1949_v34 }
 0x100   :  { %751 = vmatpush.bf16.msra.mxu2 %v1943_v37  ;;  %764 = vmatpush.bf16.msra.mxu3 %v1915_v10 }
 0x103   :  { %726 = vmatpush.bf16.msrb.mxu0 %v1905_v3  ;;  %739 = vmatpush.bf16.msrb.mxu1 %v1960_v55 }
 0x104   :  { %752 = vmatpush.bf16.msra.mxu2 %v1953_v49  ;;  %765 = vmatpush.bf16.msra.mxu3 %v1927_v25 }
 0x107   :  { %727 = vmatpush.bf16.msrb.mxu0 %v1921_v17  ;;  %740 = vmatpush.bf16.msrb.mxu1 %v1970_v1 }
 0x108   :  { %753 = vmatpush.bf16.msra.mxu2 %v1965_v59  ;;  %766 = vmatpush.bf16.msra.mxu3 %v1946_v38 }
 0x10b   :  { %728 = vmatpush.bf16.msrb.mxu0 %v1935_v31  ;;  %741 = vmatpush.bf16.msrb.mxu1 %v1978_v5 }
 0x10c   :  { %754 = vmatpush.bf16.msra.mxu2 %v1974_v4  ;;  %767 = vmatpush.bf16.msra.mxu3 %v1957_v50 }
 0x16a   :  { %v454_v22 = vpop.f32.mrf.mxu0  ;;  %v467_v45 = vpop.f32.mrf.mxu1 }
 0x16b   :  { %v501_v15 = vrot.slane %v454_v22, 6  ;;  %v502_v20 = vrot.slane %v467_v45, 6 }
 0x16d   :  { %v509_v8 = vadd.f32 %v501_v15, %v2049_v30  ;;  %v510_v29 = vadd.f32 %v502_v20, %v2059_v58 }
 0x16f   :  { %v1535_v40 = vmul.f32 -1.442695, %v509_v8  ;;  %v1536_v23 = vmul.f32 -1.442695, %v510_v29 }
 0x171   :  { %1580 = vpow2.f32 %v1535_v40  ;;  %v480_v41 = vpop.f32.mrf.mxu2  ;;  %v493_v52 = vpop.f32.mrf.mxu3 }
 0x172   :  { %1582 = vpow2.f32 %v1536_v23  ;;  %v504_v44 = vrot.slane %v493_v52, 6  ;;  %v456_v53 = vpop.f32.mrf.mxu0  ;;  %v469_v2 = vpop.f32.mrf.mxu1  ;;  %v503_v27 = vrot.slane %v480_v41, 6 }
 0x174   :  { %v512_v11 = vadd.f32 %v504_v44, %v2056_v46  ;;  %v511_v20 = vadd.f32 %v503_v27, %v2062_v35 }
 0x176   :  { %v1537_v62 = vmul.f32 -1.442695, %v512_v11 }
 0x177   :  { %v1581_v36 = vpop.eup %1580 }
 0x178   :  { %v1583_v63 = vpop.eup %1582  ;;  %v516_v60 = vadd.f32 1.0, %v1581_v36  ;;  %1584 = vpow2.f32 %v1537_v62 }
 0x179   :  { %v535_v9 = vadd.f32 1.0, %v1583_v63  ;;  %v482_v12 = vpop.f32.mrf.mxu2  ;;  %v495_v48 = vpop.f32.mrf.mxu3 }
 0x17a   :  { %1586 = vrcp.f32 %v516_v60  ;;  %v528_v44 = vand.u32 2147483648, %v516_v60  ;;  %v526_v11 = vand.u32 2147483647, %v516_v60  ;;  %vm522_vm0 = vweird.f32 %v516_v60 }
 0x17b   :  { %1588 = vrcp.f32 %v535_v9  ;;  %v547_v53 = vand.u32 2147483648, %v535_v9  ;;  %v545_v41 = vand.u32 2147483647, %v535_v9  ;;  %vm541_vm1 = vweird.f32 %v535_v9 }
 0x17c   :  { %v529_v12 = vor.u32 1.1754944e-38, %v528_v44  ;;  %vm527_vm4 = vcmp.eq.f32.partialorder %v526_v11, 8.507059e+37 }
 0x17d   :  { %vm546_vm5 = vcmp.eq.f32.partialorder %v545_v41, 8.507059e+37 }
 0x17e   :  { %v1585_v22 = vpop.eup %1584 }
 0x17f   :  { %v555_v45 = vadd.f32 1.0, %v1585_v22  ;;  %v572_v22 = vrot.slane %v2068_v56, 6 }
 0x180   :  { %v1587_v15 = vpop.eup %1586 }
 0x181   :  { %v1589_v8 = vpop.eup %1588  ;;  %v518_v29 = vmul.f32 %v1587_v15, %v516_v60  ;;  %1590 = vrcp.f32 %v555_v45  ;;  %vm523_vm14 = vweird.f32 %v1587_v15  ;;  %v567_v56 = vand.u32 2147483648, %v555_v45 }
 0x182   :  { %v537_v40 = vmul.f32 %v1589_v8, %v535_v9  ;;  %1592 = vtanh.f32 %v511_v20  ;;  %vm542_vm15 = vweird.f32 %v1589_v8  ;;  %vm524_vm2 = vmor %vm522_vm0, %vm523_vm14  ;;  %vm561_vm7 = vweird.f32 %v555_v45 }
 0x183   :  { %v519_v23 = vsub.f32 1.0, %v518_v29  ;;  %vm543_vm3 = vmor %vm541_vm1, %vm542_vm15  ;;  %v548_v29 = vor.u32 1.1754944e-38, %v547_v53  ;;  %v565_v53 = vand.u32 2147483647, %v555_v45  ;;  %v568_v11 = vor.u32 1.1754944e-38, %v567_v56 }
 0x184   :  { %v538_v52 = vsub.f32 1.0, %v537_v40 }
 0x185   :  { %v520_v2 = vmul.f32 %v1587_v15, %v519_v23  ;;  %vm566_vm9 = vcmp.eq.f32.partialorder %v565_v53, 8.507059e+37 }
 0x186   :  { %v539_v62 = vmul.f32 %v1589_v8, %v538_v52 }
 0x187   :  { %v1591_v36 = vpop.eup %1590  ;;  %v521_v63 = vadd.f32 %v1587_v15, %v520_v2 }
 0x188   :  { %v540_v48 = vadd.f32 %v1589_v8, %v539_v62  ;;  %v557_v27 = vmul.f32 %v1591_v36, %v555_v45  ;;  %v1593_v40 = vpop.eup %1592  ;;  %vm562_vm6 = vweird.f32 %v1591_v36 }
 0x189   :  { %v525_v20 = vsel %vm524_vm2, %v1587_v15, %v521_v63  ;;  %vm563_vm8 = vmor %vm561_vm7, %vm562_vm6  ;;  %vm1394_vm7 = vcmask 1043456  }
 0x18a   :  { %v530_v23 = vsel %vm527_vm4, %v529_v12, %v525_v20  ;;  %v544_v33 = vsel %vm543_vm3, %v1589_v8, %v540_v48  ;;  %v558_v52 = vsub.f32 1.0, %v557_v27 }
 0x18b   :  { %v549_v26 = vsel %vm546_vm5, %v548_v29, %v544_v33  ;;  %v575_v42 = vmul.f32 %v1593_v40, %v530_v23  ;;  %vm1392_vm5 = vcmask 1041408  }
 0x18c   :  { %v574_v2 = vmul.f32 %v572_v22, %v549_v26  ;;  %v559_v60 = vmul.f32 %v1591_v36, %v558_v52 }
 0x18e   :  { %v2112_v9 = vadd.f32 %v575_v42, %v574_v2  ;;  %v560_v44 = vadd.f32 %v1591_v36, %v559_v60 }
 0x190   :  { %1594 = vtanh.f32 %v2112_v9  ;;  %v564_v15 = vsel %vm563_vm8, %v1591_v36, %v560_v44 }
 0x191   :  { %v569_v62 = vsel %vm566_vm9, %v568_v11, %v564_v15 }
 0x196   :  { %v1595_v8 = vpop.eup %1594 }
 0x197   :  { %v2115_v41 = vmul.f32 %v1595_v8, %v569_v62 }
 0x199   :  { %v579_v26 = vpack.c.bf16 %v2115_v41, %v2115_v41 }
 0x19b   :  { %v581_v33 = vrot.slane %v579_v26, 1 }
 0x19d   :  { %591 = vmatmul.bf16.vlgmr.msra.gmra.mxu0 %v581_v33  ;;  %604 = vmatmul.bf16.vlgmr.msra.gmra.mxu1 %v581_v33 }
 0x19e   :  { %617 = vmatmul.bf16.vlgmr.msrb.gmra.mxu2 %v581_v33  ;;  %630 = vmatmul.bf16.vlgmr.msrb.gmra.mxu3 %v581_v33 }
 0x19f   :  { %859 = vmatpush.bf16.msra.mxu0 %v1851_v6  ;;  %872 = vmatpush.bf16.msra.mxu1 %v1883_v51 }
 0x1a0   :  { %885 = vmatpush.bf16.msrb.mxu2 %v1876_v43  ;;  %898 = vmatpush.bf16.msrb.mxu3 %v1857_v19 }
 0x1a3   :  { %860 = vmatpush.bf16.msra.mxu0 %v1854_v13  ;;  %873 = vmatpush.bf16.msra.mxu1 %v1900_v0 }
 0x1a4   :  { %886 = vmatpush.bf16.msrb.mxu2 %v1889_v57  ;;  %899 = vmatpush.bf16.msrb.mxu3 %v1864_v32 }
 0x1a7   :  { %861 = vmatpush.bf16.msra.mxu0 %v1860_v24  ;;  %874 = vmatpush.bf16.msra.mxu1 %v1918_v14 }
 0x1a8   :  { %887 = vmatpush.bf16.msrb.mxu2 %v1910_v7  ;;  %900 = vmatpush.bf16.msrb.mxu3 %v1881_v47 }
 0x1ab   :  { %862 = vmatpush.bf16.msra.mxu0 %v1874_v39  ;;  %875 = vmatpush.bf16.msra.mxu1 %v1930_v28 }
 0x1ac   :  { %888 = vmatpush.bf16.msrb.mxu2 %v1924_v21  ;;  %901 = vmatpush.bf16.msrb.mxu3 %v1897_v61 }
 0x1af   :  { %863 = vmatpush.bf16.msra.mxu0 %v1886_v54  ;;  %876 = vmatpush.bf16.msra.mxu1 %v1949_v34 }
 0x1b0   :  { %889 = vmatpush.bf16.msrb.mxu2 %v1943_v37  ;;  %902 = vmatpush.bf16.msrb.mxu3 %v1915_v10 }
 0x1b3   :  { %864 = vmatpush.bf16.msra.mxu0 %v1905_v3  ;;  %877 = vmatpush.bf16.msra.mxu1 %v1960_v55 }
 0x1b4   :  { %890 = vmatpush.bf16.msrb.mxu2 %v1953_v49  ;;  %903 = vmatpush.bf16.msrb.mxu3 %v1927_v25 }
 0x1b7   :  { %865 = vmatpush.bf16.msra.mxu0 %v1921_v17  ;;  %878 = vmatpush.bf16.msra.mxu1 %v1970_v1 }
 0x1b8   :  { %891 = vmatpush.bf16.msrb.mxu2 %v1965_v59  ;;  %904 = vmatpush.bf16.msrb.mxu3 %v1946_v38 }
 0x1bb   :  { %866 = vmatpush.bf16.msra.mxu0 %v1935_v31  ;;  %879 = vmatpush.bf16.msra.mxu1 %v1978_v5 }
 0x1bc   :  { %892 = vmatpush.bf16.msrb.mxu2 %v1974_v4  ;;  %905 = vmatpush.bf16.msrb.mxu3 %v1957_v50 }
 0x21a   :  { %v592_v42 = vpop.f32.mrf.mxu0  ;;  %v605_v45 = vpop.f32.mrf.mxu1 }
 0x21b   :  { %v639_v36 = vrot.slane %v592_v42, 4  ;;  %v640_v63 = vrot.slane %v605_v45, 4 }
 0x21d   :  { %v647_v12 = vadd.f32 %v639_v36, %v2049_v30  ;;  %v648_v48 = vadd.f32 %v640_v63, %v2059_v58 }
 0x21f   :  { %v1538_v27 = vmul.f32 -1.442695, %v647_v12  ;;  %v1539_v22 = vmul.f32 -1.442695, %v648_v48 }
 0x221   :  { %1596 = vpow2.f32 %v1538_v27  ;;  %v618_v29 = vpop.f32.mrf.mxu2  ;;  %v631_v20 = vpop.f32.mrf.mxu3 }
 0x222   :  { %1598 = vpow2.f32 %v1539_v22  ;;  %v642_v40 = vrot.slane %v631_v20, 4  ;;  %v594_v23 = vpop.f32.mrf.mxu0  ;;  %v607_v52 = vpop.f32.mrf.mxu1  ;;  %v641_v62 = vrot.slane %v618_v29, 4 }
 0x224   :  { %v650_v2 = vadd.f32 %v642_v40, %v2056_v46  ;;  %v649_v45 = vadd.f32 %v641_v62, %v2062_v35 }
 0x226   :  { %v1540_v60 = vmul.f32 -1.442695, %v650_v2 }
 0x227   :  { %v1597_v44 = vpop.eup %1596 }
 0x228   :  { %v1599_v56 = vpop.eup %1598  ;;  %v654_v53 = vadd.f32 1.0, %v1597_v44  ;;  %1600 = vpow2.f32 %v1540_v60 }
 0x229   :  { %v673_v15 = vadd.f32 1.0, %v1599_v56  ;;  %v620_v11 = vpop.f32.mrf.mxu2  ;;  %v633_v8 = vpop.f32.mrf.mxu3 }
 0x22a   :  { %1602 = vrcp.f32 %v654_v53  ;;  %v666_v22 = vand.u32 2147483648, %v654_v53  ;;  %v664_v23 = vand.u32 2147483647, %v654_v53  ;;  %vm660_vm12 = vweird.f32 %v654_v53 }
 0x22b   :  { %1604 = vrcp.f32 %v673_v15  ;;  %v685_v20 = vand.u32 2147483648, %v673_v15  ;;  %v683_v29 = vand.u32 2147483647, %v673_v15  ;;  %vm679_vm13 = vweird.f32 %v673_v15 }
 0x22c   :  { %v667_v44 = vor.u32 1.1754944e-38, %v666_v22  ;;  %v710_v8 = vrot.slane %v2112_v9, 6  ;;  %vm665_vm0 = vcmp.eq.f32.partialorder %v664_v23, 8.507059e+37 }
 0x22d   :  { %v686_v62 = vor.u32 1.1754944e-38, %v685_v20  ;;  %vm684_vm1 = vcmp.eq.f32.partialorder %v683_v29, 8.507059e+37 }
 0x22e   :  { %v1601_v26 = vpop.eup %1600 }
 0x22f   :  { %v693_v33 = vadd.f32 1.0, %v1601_v26 }
 0x230   :  { %v1603_v42 = vpop.eup %1602 }
 0x231   :  { %v1605_v36 = vpop.eup %1604  ;;  %v656_v63 = vmul.f32 %v1603_v42, %v654_v53  ;;  %1606 = vrcp.f32 %v693_v33  ;;  %vm661_vm10 = vweird.f32 %v1603_v42  ;;  %v705_v9 = vand.u32 2147483648, %v693_v33 }
 0x232   :  { %v675_v12 = vmul.f32 %v1605_v36, %v673_v15  ;;  %1608 = vtanh.f32 %v649_v45  ;;  %vm680_vm11 = vweird.f32 %v1605_v36  ;;  %vm662_vm14 = vmor %vm660_vm12, %vm661_vm10  ;;  %vm699_vm3 = vweird.f32 %v693_v33 }
 0x233   :  { %v657_v48 = vsub.f32 1.0, %v656_v63  ;;  %vm681_vm15 = vmor %vm679_vm13, %vm680_vm11  ;;  %v703_v20 = vand.u32 2147483647, %v693_v33  ;;  %v706_v23 = vor.u32 1.1754944e-38, %v705_v9 }
 0x234   :  { %v676_v27 = vsub.f32 1.0, %v675_v12 }
 0x235   :  { %v658_v40 = vmul.f32 %v1603_v42, %v657_v48  ;;  %vm704_vm6 = vcmp.eq.f32.partialorder %v703_v20, 8.507059e+37 }
 0x236   :  { %v677_v52 = vmul.f32 %v1605_v36, %v676_v27 }
 0x237   :  { %v1607_v2 = vpop.eup %1606  ;;  %v659_v60 = vadd.f32 %v1603_v42, %v658_v40 }
 0x238   :  { %v678_v56 = vadd.f32 %v1605_v36, %v677_v52  ;;  %v695_v11 = vmul.f32 %v1607_v2, %v693_v33  ;;  %v1609_v45 = vpop.eup %1608  ;;  %vm700_vm2 = vweird.f32 %v1607_v2 }
 0x239   :  { %v663_v26 = vsel %vm662_vm14, %v1603_v42, %v659_v60  ;;  %vm701_vm4 = vmor %vm699_vm3, %vm700_vm2 }
 0x23a   :  { %v668_v63 = vsel %vm665_vm0, %v667_v44, %v663_v26  ;;  %v682_v12 = vsel %vm681_vm15, %v1605_v36, %v678_v56  ;;  %v696_v48 = vsub.f32 1.0, %v695_v11 }
 0x23b   :  { %v687_v27 = vsel %vm684_vm1, %v686_v62, %v682_v12  ;;  %v713_v16 = vmul.f32 %v1609_v45, %v668_v63 }
 0x23c   :  { %v712_v40 = vmul.f32 %v710_v8, %v687_v27  ;;  %v697_v53 = vmul.f32 %v1607_v2, %v696_v48 }
 0x23e   :  { %v2156_v15 = vadd.f32 %v713_v16, %v712_v40  ;;  %v698_v22 = vadd.f32 %v1607_v2, %v697_v53  ;;  %v1393_v16 = vsel %vm1392_vm5, %v2071_v18, %v2115_v41 }
 0x240   :  { %1610 = vtanh.f32 %v2156_v15  ;;  %v702_v42 = vsel %vm701_vm4, %v1607_v2, %v698_v22  ;;  %vm1396_vm4 = vcmask 1045504  }
 0x241   :  { %v707_v52 = vsel %vm704_vm6, %v706_v23, %v702_v42 }
 0x246   :  { %v1611_v36 = vpop.eup %1610 }
 0x247   :  { %v716_v29 = vmul.f32 %v1611_v36, %v707_v52 }
 0x249   :  { %v717_v60 = vpack.c.bf16 %v716_v29, %v716_v29  ;;  %v2163_v44 = vsel %vm1394_vm7, %v1393_v16, %v716_v29 }
 0x24b   :  { %v719_v56 = vrot.slane %v717_v60, 2 }
 0x24d   :  { %729 = vmatmul.bf16.vlgmr.msrb.gmra.mxu0 %v719_v56  ;;  %742 = vmatmul.bf16.vlgmr.msrb.gmra.mxu1 %v719_v56 }
 0x24e   :  { %755 = vmatmul.bf16.vlgmr.msra.gmra.mxu2 %v719_v56  ;;  %768 = vmatmul.bf16.vlgmr.msra.gmra.mxu3 %v719_v56 }
 0x24f   :  { %982 = vmatpush.bf16.msrb.mxu0 %v1851_v6  ;;  %995 = vmatpush.bf16.msrb.mxu1 %v1883_v51 }
 0x250   :  { %1008 = vmatpush.bf16.msra.mxu2 %v1876_v43  ;;  %1021 = vmatpush.bf16.msra.mxu3 %v1857_v19 }
 0x253   :  { %983 = vmatpush.bf16.msrb.mxu0 %v1854_v13  ;;  %996 = vmatpush.bf16.msrb.mxu1 %v1900_v0 }
 0x254   :  { %1009 = vmatpush.bf16.msra.mxu2 %v1889_v57  ;;  %1022 = vmatpush.bf16.msra.mxu3 %v1864_v32 }
 0x257   :  { %984 = vmatpush.bf16.msrb.mxu0 %v1860_v24  ;;  %997 = vmatpush.bf16.msrb.mxu1 %v1918_v14 }
 0x258   :  { %1010 = vmatpush.bf16.msra.mxu2 %v1910_v7  ;;  %1023 = vmatpush.bf16.msra.mxu3 %v1881_v47 }
 0x25b   :  { %985 = vmatpush.bf16.msrb.mxu0 %v1874_v39  ;;  %998 = vmatpush.bf16.msrb.mxu1 %v1930_v28 }
 0x25c   :  { %1011 = vmatpush.bf16.msra.mxu2 %v1924_v21  ;;  %1024 = vmatpush.bf16.msra.mxu3 %v1897_v61 }
 0x25f   :  { %986 = vmatpush.bf16.msrb.mxu0 %v1886_v54  ;;  %999 = vmatpush.bf16.msrb.mxu1 %v1949_v34 }
 0x260   :  { %1012 = vmatpush.bf16.msra.mxu2 %v1943_v37  ;;  %1025 = vmatpush.bf16.msra.mxu3 %v1915_v10 }
 0x263   :  { %987 = vmatpush.bf16.msrb.mxu0 %v1905_v3  ;;  %1000 = vmatpush.bf16.msrb.mxu1 %v1960_v55 }
 0x264   :  { %1013 = vmatpush.bf16.msra.mxu2 %v1953_v49  ;;  %1026 = vmatpush.bf16.msra.mxu3 %v1927_v25 }
 0x267   :  { %988 = vmatpush.bf16.msrb.mxu0 %v1921_v17  ;;  %1001 = vmatpush.bf16.msrb.mxu1 %v1970_v1 }
 0x268   :  { %1014 = vmatpush.bf16.msra.mxu2 %v1965_v59  ;;  %1027 = vmatpush.bf16.msra.mxu3 %v1946_v38 }
 0x26b   :  { %989 = vmatpush.bf16.msrb.mxu0 %v1935_v31  ;;  %1002 = vmatpush.bf16.msrb.mxu1 %v1978_v5 }
 0x26c   :  { %1015 = vmatpush.bf16.msra.mxu2 %v1974_v4  ;;  %1028 = vmatpush.bf16.msra.mxu3 %v1957_v50 }
 0x2ca   :  { %v730_v18 = vpop.f32.mrf.mxu0  ;;  %v743_v41 = vpop.f32.mrf.mxu1 }
 0x2cb   :  { %v777_v33 = vrot.slane %v730_v18, 2  ;;  %v778_v2 = vrot.slane %v743_v41, 2 }
 0x2cd   :  { %v785_v11 = vadd.f32 %v777_v33, %v2049_v30  ;;  %v786_v8 = vadd.f32 %v778_v2, %v2059_v58 }
 0x2cf   :  { %v1541_v62 = vmul.f32 -1.442695, %v785_v11  ;;  %v1542_v26 = vmul.f32 -1.442695, %v786_v8 }
 0x2d1   :  { %1612 = vpow2.f32 %v1541_v62  ;;  %v756_v45 = vpop.f32.mrf.mxu2  ;;  %v769_v63 = vpop.f32.mrf.mxu3 }
 0x2d2   :  { %1614 = vpow2.f32 %v1542_v26  ;;  %v780_v12 = vrot.slane %v769_v63, 2  ;;  %v732_v48 = vpop.f32.mrf.mxu0  ;;  %v745_v27 = vpop.f32.mrf.mxu1  ;;  %v779_v58 = vrot.slane %v756_v45, 2 }
 0x2d3   :  { %v848_v27 = vrot.slane %v2156_v15, 6 }
 0x2d4   :  { %v788_v40 = vadd.f32 %v780_v12, %v2056_v46  ;;  %v787_v16 = vadd.f32 %v779_v58, %v2062_v35 }
 0x2d6   :  { %v1543_v53 = vmul.f32 -1.442695, %v788_v40 }
 0x2d7   :  { %v1613_v22 = vpop.eup %1612 }
 0x2d8   :  { %v1615_v9 = vpop.eup %1614  ;;  %v792_v20 = vadd.f32 1.0, %v1613_v22  ;;  %1616 = vpow2.f32 %v1543_v53 }
 0x2d9   :  { %v811_v42 = vadd.f32 1.0, %v1615_v9  ;;  %v758_v30 = vpop.f32.mrf.mxu2  ;;  %v771_v23 = vpop.f32.mrf.mxu3 }
 0x2da   :  { %1618 = vrcp.f32 %v792_v20  ;;  %v804_v33 = vand.u32 2147483648, %v792_v20  ;;  %v802_v8 = vand.u32 2147483647, %v792_v20  ;;  %vm798_vm10 = vweird.f32 %v792_v20 }
 0x2db   :  { %1620 = vrcp.f32 %v811_v42  ;;  %v823_v2 = vand.u32 2147483648, %v811_v42  ;;  %v821_v26 = vand.u32 2147483647, %v811_v42  ;;  %vm817_vm11 = vweird.f32 %v811_v42 }
 0x2dc   :  { %v805_v35 = vor.u32 1.1754944e-38, %v804_v33  ;;  %vm803_vm14 = vcmp.eq.f32.partialorder %v802_v8, 8.507059e+37 }
 0x2dd   :  { %v824_v40 = vor.u32 1.1754944e-38, %v823_v2  ;;  %vm822_vm15 = vcmp.eq.f32.partialorder %v821_v26, 8.507059e+37 }
 0x2de   :  { %v1617_v36 = vpop.eup %1616 }
 0x2df   :  { %v831_v52 = vadd.f32 1.0, %v1617_v36 }
 0x2e0   :  { %v1619_v29 = vpop.eup %1618 }
 0x2e1   :  { %v1621_v60 = vpop.eup %1620  ;;  %v794_v56 = vmul.f32 %v1619_v29, %v792_v20  ;;  %1622 = vrcp.f32 %v831_v52  ;;  %vm799_vm8 = vweird.f32 %v1619_v29  ;;  %v843_v15 = vand.u32 2147483648, %v831_v52 }
 0x2e2   :  { %v813_v46 = vmul.f32 %v1621_v60, %v811_v42  ;;  %1624 = vtanh.f32 %v787_v16  ;;  %vm818_vm9 = vweird.f32 %v1621_v60  ;;  %vm800_vm12 = vmor %vm798_vm10, %vm799_vm8  ;;  %vm837_vm1 = vweird.f32 %v831_v52 }
 0x2e3   :  { %v795_v18 = vsub.f32 1.0, %v794_v56  ;;  %vm819_vm13 = vmor %vm817_vm11, %vm818_vm9 }
 0x2e4   :  { %v814_v41 = vsub.f32 1.0, %v813_v46  ;;  %v841_v46 = vand.u32 2147483647, %v831_v52 }
 0x2e5   :  { %v796_v11 = vmul.f32 %v1619_v29, %v795_v18  ;;  %v844_v18 = vor.u32 1.1754944e-38, %v843_v15 }
 0x2e6   :  { %v815_v62 = vmul.f32 %v1621_v60, %v814_v41  ;;  %vm842_vm3 = vcmp.eq.f32.partialorder %v841_v46, 8.507059e+37 }
 0x2e7   :  { %v1623_v45 = vpop.eup %1622  ;;  %v797_v63 = vadd.f32 %v1619_v29, %v796_v11 }
 0x2e8   :  { %v816_v12 = vadd.f32 %v1621_v60, %v815_v62  ;;  %v833_v48 = vmul.f32 %v1623_v45, %v831_v52  ;;  %v1625_v22 = vpop.eup %1624  ;;  %vm838_vm0 = vweird.f32 %v1623_v45  ;;  %v2363_v62 = vld [vmem:[#allocation9_spill] sm:$0xff] }
 0x2e9   :  { %v801_v53 = vsel %vm800_vm12, %v1619_v29, %v797_v63  ;;  %vm839_vm2 = vmor %vm837_vm1, %vm838_vm0 }
 0x2ea   :  { %v806_v9 = vsel %vm803_vm14, %v805_v35, %v801_v53  ;;  %v820_v30 = vsel %vm819_vm13, %v1621_v60, %v816_v12  ;;  %v834_v23 = vsub.f32 1.0, %v833_v48 }
 0x2eb   :  { %v825_v58 = vsel %vm822_vm15, %v824_v40, %v820_v30  ;;  %v851_v36 = vmul.f32 %v1625_v22, %v806_v9  ;;  %v2365_v40 = vld [vmem:[#allocation10_spill] sm:$0xff] }
 0x2ec   :  { %v850_v16 = vmul.f32 %v848_v27, %v825_v58  ;;  %v835_v20 = vmul.f32 %v1623_v45, %v834_v23 }
 0x2ee   :  { %v2202_v42 = vadd.f32 %v851_v36, %v850_v16  ;;  %v836_v56 = vadd.f32 %v1623_v45, %v835_v20 }
 0x2f0   :  { %1626 = vtanh.f32 %v2202_v42  ;;  %v840_v29 = vsel %vm839_vm2, %v1623_v45, %v836_v56  ;;  %v2364_v45 = vld [vmem:[#allocation12_spill] sm:$0xff] }
 0x2f1   :  { %v845_v41 = vsel %vm842_vm3, %v844_v18, %v840_v29  ;;  %v2366_v18 = vld [vmem:[#allocation11_spill] sm:$0xff] }
 0x2f6   :  { %v1627_v60 = vpop.eup %1626 }
 0x2f7   :  { %v854_v33 = vmul.f32 %v1627_v60, %v845_v41 }
 0x2f9   :  { %v855_v2 = vpack.c.bf16 %v854_v33, %v854_v33  ;;  %v2207_v11 = vsel %vm1396_vm4, %v2163_v44, %v854_v33 }
 0x2fb   :  { %v857_v8 = vrot.slane %v855_v2, 3 }
 0x2fd   :  { %867 = vmatmul.bf16.vlgmr.msra.gmra.mxu0 %v857_v8  ;;  %880 = vmatmul.bf16.vlgmr.msra.gmra.mxu1 %v857_v8 }
 0x2fe   :  { %893 = vmatmul.bf16.vlgmr.msrb.gmra.mxu2 %v857_v8  ;;  %906 = vmatmul.bf16.vlgmr.msrb.gmra.mxu3 %v857_v8 }
 0x2ff   :  { %1120 = vmatpush.bf16.msra.mxu0 %v1851_v6  ;;  %1133 = vmatpush.bf16.msra.mxu1 %v1883_v51 }
 0x300   :  { %1146 = vmatpush.bf16.msrb.mxu2 %v1876_v43  ;;  %1159 = vmatpush.bf16.msrb.mxu3 %v1857_v19 }
 0x303   :  { %1121 = vmatpush.bf16.msra.mxu0 %v1854_v13  ;;  %1134 = vmatpush.bf16.msra.mxu1 %v1900_v0 }
 0x304   :  { %1147 = vmatpush.bf16.msrb.mxu2 %v1889_v57  ;;  %1160 = vmatpush.bf16.msrb.mxu3 %v1864_v32 }
 0x307   :  { %1122 = vmatpush.bf16.msra.mxu0 %v1860_v24  ;;  %1135 = vmatpush.bf16.msra.mxu1 %v1918_v14 }
 0x308   :  { %1148 = vmatpush.bf16.msrb.mxu2 %v1910_v7  ;;  %1161 = vmatpush.bf16.msrb.mxu3 %v1881_v47 }
 0x30b   :  { %1123 = vmatpush.bf16.msra.mxu0 %v1874_v39  ;;  %1136 = vmatpush.bf16.msra.mxu1 %v1930_v28 }
 0x30c   :  { %1149 = vmatpush.bf16.msrb.mxu2 %v1924_v21  ;;  %1162 = vmatpush.bf16.msrb.mxu3 %v1897_v61 }
 0x30f   :  { %1124 = vmatpush.bf16.msra.mxu0 %v1886_v54  ;;  %1137 = vmatpush.bf16.msra.mxu1 %v1949_v34 }
 0x310   :  { %1150 = vmatpush.bf16.msrb.mxu2 %v1943_v37  ;;  %1163 = vmatpush.bf16.msrb.mxu3 %v1915_v10 }
 0x313   :  { %1125 = vmatpush.bf16.msra.mxu0 %v1905_v3  ;;  %1138 = vmatpush.bf16.msra.mxu1 %v1960_v55 }
 0x314   :  { %1151 = vmatpush.bf16.msrb.mxu2 %v1953_v49  ;;  %1164 = vmatpush.bf16.msrb.mxu3 %v1927_v25 }
 0x317   :  { %1126 = vmatpush.bf16.msra.mxu0 %v1921_v17  ;;  %1139 = vmatpush.bf16.msra.mxu1 %v1970_v1 }
 0x318   :  { %1152 = vmatpush.bf16.msrb.mxu2 %v1965_v59  ;;  %1165 = vmatpush.bf16.msrb.mxu3 %v1946_v38 }
 0x31b   :  { %1127 = vmatpush.bf16.msra.mxu0 %v1935_v31  ;;  %1140 = vmatpush.bf16.msra.mxu1 %v1978_v5 }
 0x31c   :  { %1153 = vmatpush.bf16.msrb.mxu2 %v1974_v4  ;;  %1166 = vmatpush.bf16.msrb.mxu3 %v1957_v50 }
 0x37a   :  { %v868_v44 = vpop.f32.mrf.mxu0  ;;  %v881_v52 = vpop.f32.mrf.mxu1 }
 0x37b   :  { %v911_v26 = vadd.f32 %v868_v44, %v2363_v62  ;;  %v912_v63 = vadd.f32 %v881_v52, %v2364_v45 }
 0x37d   :  { %v1544_v35 = vmul.f32 -1.442695, %v911_v26  ;;  %v1545_v12 = vmul.f32 -1.442695, %v912_v63 }
 0x37f   :  { %1628 = vpow2.f32 %v1544_v35 }
 0x380   :  { %1630 = vpow2.f32 %v1545_v12 }
 0x381   :  { %v894_v48 = vpop.f32.mrf.mxu2  ;;  %v907_v27 = vpop.f32.mrf.mxu3 }
 0x382   :  { %v914_v53 = vadd.f32 %v907_v27, %v2365_v40  ;;  %v870_v22 = vpop.f32.mrf.mxu0  ;;  %v883_v9 = vpop.f32.mrf.mxu1  ;;  %v913_v60 = vadd.f32 %v894_v48, %v2366_v18 }
 0x384   :  { %v1546_v30 = vmul.f32 -1.442695, %v914_v53 }
 0x385   :  { %v1629_v23 = vpop.eup %1628 }
 0x386   :  { %v1631_v58 = vpop.eup %1630  ;;  %v918_v36 = vadd.f32 1.0, %v1629_v23  ;;  %1632 = vpow2.f32 %v1546_v30 }
 0x387   :  { %v937_v16 = vadd.f32 1.0, %v1631_v58 }
 0x388   :  { %1634 = vrcp.f32 %v918_v36  ;;  %v930_v52 = vand.u32 2147483648, %v918_v36  ;;  %v928_v35 = vand.u32 2147483647, %v918_v36  ;;  %vm924_vm9 = vweird.f32 %v918_v36 }
 0x389   :  { %1636 = vrcp.f32 %v937_v16  ;;  %v896_v20 = vpop.f32.mrf.mxu2  ;;  %v909_v56 = vpop.f32.mrf.mxu3  ;;  %v949_v26 = vand.u32 2147483648, %v937_v16  ;;  %v947_v27 = vand.u32 2147483647, %v937_v16  ;;  %vm943_vm10 = vweird.f32 %v937_v16 }
 0x38a   :  { %v931_v48 = vor.u32 1.1754944e-38, %v930_v52  ;;  %vm929_vm13 = vcmp.eq.f32.partialorder %v928_v35, 8.507059e+37  ;;  %v974_v20 = vrot.slane %v2202_v42, 6 }
 0x38b   :  { %v950_v23 = vor.u32 1.1754944e-38, %v949_v26  ;;  %vm948_vm14 = vcmp.eq.f32.partialorder %v947_v27, 8.507059e+37 }
 0x38c   :  { %v1633_v15 = vpop.eup %1632 }
 0x38d   :  { %v957_v46 = vadd.f32 1.0, %v1633_v15 }
 0x38e   :  { %v1635_v29 = vpop.eup %1634 }
 0x38f   :  { %v1637_v41 = vpop.eup %1636  ;;  %v920_v33 = vmul.f32 %v1635_v29, %v918_v36  ;;  %1638 = vrcp.f32 %v957_v46  ;;  %vm925_vm6 = vweird.f32 %v1635_v29  ;;  %v969_v26 = vand.u32 2147483648, %v957_v46 }
 0x390   :  { %v939_v2 = vmul.f32 %v1637_v41, %v937_v16  ;;  %1640 = vtanh.f32 %v913_v60  ;;  %vm944_vm8 = vweird.f32 %v1637_v41  ;;  %vm926_vm11 = vmor %vm924_vm9, %vm925_vm6  ;;  %vm963_vm0 = vweird.f32 %v957_v46 }
 0x391   :  { %v921_v8 = vsub.f32 1.0, %v920_v33  ;;  %vm945_vm12 = vmor %vm943_vm10, %vm944_vm8 }
 0x392   :  { %v940_v44 = vsub.f32 1.0, %v939_v2 }
 0x393   :  { %v922_v63 = vmul.f32 %v1635_v29, %v921_v8 }
 0x394   :  { %v941_v12 = vmul.f32 %v1637_v41, %v940_v44 }
 0x395   :  { %v1639_v53 = vpop.eup %1638  ;;  %v923_v22 = vadd.f32 %v1635_v29, %v922_v63  ;;  %v970_v63 = vor.u32 1.1754944e-38, %v969_v26 }
 0x396   :  { %v942_v9 = vadd.f32 %v1637_v41, %v941_v12  ;;  %v959_v30 = vmul.f32 %v1639_v53, %v957_v46  ;;  %v1641_v56 = vpop.eup %1640  ;;  %vm964_vm15 = vweird.f32 %v1639_v53 }
 0x397   :  { %v927_v58 = vsel %vm926_vm11, %v1635_v29, %v923_v22  ;;  %v967_v29 = vand.u32 2147483647, %v957_v46  ;;  %vm965_vm1 = vmor %vm963_vm0, %vm964_vm15 }
 0x398   :  { %v932_v15 = vsel %vm929_vm13, %v931_v48, %v927_v58  ;;  %v946_v60 = vsel %vm945_vm12, %v1637_v41, %v942_v9  ;;  %v960_v33 = vsub.f32 1.0, %v959_v30 }
 0x399   :  { %v951_v2 = vsel %vm948_vm14, %v950_v23, %v946_v60  ;;  %v977_v8 = vmul.f32 %v1641_v56, %v932_v15  ;;  %vm968_vm2 = vcmp.eq.f32.partialorder %v967_v29, 8.507059e+37 }
 0x39a   :  { %v976_v44 = vmul.f32 %v974_v20, %v951_v2  ;;  %v961_v36 = vmul.f32 %v1639_v53, %v960_v33 }
 0x39c   :  { %v2246_v16 = vadd.f32 %v977_v8, %v976_v44  ;;  %v962_v52 = vadd.f32 %v1639_v53, %v961_v36 }
 0x39e   :  { %1642 = vtanh.f32 %v2246_v16  ;;  %v966_v42 = vsel %vm965_vm1, %v1639_v53, %v962_v52  ;;  %v1109_v15 = vrot.slane %v2246_v16, 6 }
 0x39f   :  { %v971_v35 = vsel %vm968_vm2, %v970_v63, %v966_v42 }
 0x3a4   :  { %v1643_v41 = vpop.eup %1642 }
 0x3a5   :  { %v2249_v12 = vmul.f32 %v1643_v41, %v971_v35 }
 0x3a7   :  { %v981_v27 = vpack.c.bf16 %v2249_v12, %v2249_v12 }
 0x3a9   :  { %990 = vmatmul.bf16.vlgmr.msrb.gmra.mxu0 %v981_v27  ;;  %1003 = vmatmul.bf16.vlgmr.msrb.gmra.mxu1 %v981_v27 }
 0x3aa   :  { %1016 = vmatmul.bf16.vlgmr.msra.gmra.mxu2 %v981_v27  ;;  %1029 = vmatmul.bf16.vlgmr.msra.gmra.mxu3 %v981_v27 }
 0x3ab   :  { %1258 = vmatpush.bf16.msrb.mxu0 %v1851_v6  ;;  %1271 = vmatpush.bf16.msrb.mxu1 %v1883_v51 }
 0x3ac   :  { %1284 = vmatpush.bf16.msra.mxu2 %v1876_v43  ;;  %1297 = vmatpush.bf16.msra.mxu3 %v1857_v19 }
 0x3af   :  { %1259 = vmatpush.bf16.msrb.mxu0 %v1854_v13  ;;  %1272 = vmatpush.bf16.msrb.mxu1 %v1900_v0 }
 0x3b0   :  { %1285 = vmatpush.bf16.msra.mxu2 %v1889_v57  ;;  %1298 = vmatpush.bf16.msra.mxu3 %v1864_v32 }
 0x3b3   :  { %1260 = vmatpush.bf16.msrb.mxu0 %v1860_v24  ;;  %1273 = vmatpush.bf16.msrb.mxu1 %v1918_v14 }
 0x3b4   :  { %1286 = vmatpush.bf16.msra.mxu2 %v1910_v7  ;;  %1299 = vmatpush.bf16.msra.mxu3 %v1881_v47 }
 0x3b7   :  { %1261 = vmatpush.bf16.msrb.mxu0 %v1874_v39  ;;  %1274 = vmatpush.bf16.msrb.mxu1 %v1930_v28 }
 0x3b8   :  { %1287 = vmatpush.bf16.msra.mxu2 %v1924_v21  ;;  %1300 = vmatpush.bf16.msra.mxu3 %v1897_v61 }
 0x3bb   :  { %1262 = vmatpush.bf16.msrb.mxu0 %v1886_v54  ;;  %1275 = vmatpush.bf16.msrb.mxu1 %v1949_v34 }
 0x3bc   :  { %1288 = vmatpush.bf16.msra.mxu2 %v1943_v37  ;;  %1301 = vmatpush.bf16.msra.mxu3 %v1915_v10 }
 0x3bf   :  { %1263 = vmatpush.bf16.msrb.mxu0 %v1905_v3  ;;  %1276 = vmatpush.bf16.msrb.mxu1 %v1960_v55 }
 0x3c0   :  { %1289 = vmatpush.bf16.msra.mxu2 %v1953_v49  ;;  %1302 = vmatpush.bf16.msra.mxu3 %v1927_v25 }
 0x3c3   :  { %1264 = vmatpush.bf16.msrb.mxu0 %v1921_v17  ;;  %1277 = vmatpush.bf16.msrb.mxu1 %v1970_v1 }
 0x3c4   :  { %1290 = vmatpush.bf16.msra.mxu2 %v1965_v59  ;;  %1303 = vmatpush.bf16.msra.mxu3 %v1946_v38 }
 0x3c7   :  { %1265 = vmatpush.bf16.msrb.mxu0 %v1935_v31  ;;  %1278 = vmatpush.bf16.msrb.mxu1 %v1978_v5 }
 0x3c8   :  { %1291 = vmatpush.bf16.msra.mxu2 %v1974_v4  ;;  %1304 = vmatpush.bf16.msra.mxu3 %v1957_v50 }
 0x426   :  { %v991_v6 = vpop.f32.mrf.mxu0  ;;  %v1004_v13 = vpop.f32.mrf.mxu1 }
 0x427   :  { %v1038_v19 = vrot.slane %v991_v6, 6  ;;  %v1039_v24 = vrot.slane %v1004_v13, 6 }
 0x429   :  { %v1046_v32 = vadd.f32 %v1038_v19, %v2363_v62  ;;  %v1047_v39 = vadd.f32 %v1039_v24, %v2364_v45 }
 0x42b   :  { %v1547_v43 = vmul.f32 -1.442695, %v1046_v32  ;;  %v1548_v47 = vmul.f32 -1.442695, %v1047_v39 }
 0x42d   :  { %1644 = vpow2.f32 %v1547_v43  ;;  %v1017_v51 = vpop.f32.mrf.mxu2  ;;  %v1030_v54 = vpop.f32.mrf.mxu3 }
 0x42e   :  { %1646 = vpow2.f32 %v1548_v47  ;;  %v1041_v57 = vrot.slane %v1030_v54, 6  ;;  %v993_v61 = vpop.f32.mrf.mxu0  ;;  %v1006_v0 = vpop.f32.mrf.mxu1  ;;  %v1040_v31 = vrot.slane %v1017_v51, 6 }
 0x430   :  { %v1049_v3 = vadd.f32 %v1041_v57, %v2365_v40  ;;  %v1048_v49 = vadd.f32 %v1040_v31, %v2366_v18 }
 0x432   :  { %v1549_v7 = vmul.f32 -1.442695, %v1049_v3 }
 0x433   :  { %v1645_v10 = vpop.eup %1644 }
 0x434   :  { %v1647_v14 = vpop.eup %1646  ;;  %v1053_v17 = vadd.f32 1.0, %v1645_v10  ;;  %1648 = vpow2.f32 %v1549_v7 }
 0x435   :  { %v1072_v21 = vadd.f32 1.0, %v1647_v14  ;;  %v1019_v25 = vpop.f32.mrf.mxu2  ;;  %v1032_v28 = vpop.f32.mrf.mxu3 }
 0x436   :  { %1650 = vrcp.f32 %v1053_v17  ;;  %v1065_v5 = vand.u32 2147483648, %v1053_v17  ;;  %v1063_v22 = vand.u32 2147483647, %v1053_v17  ;;  %vm1059_vm8 = vweird.f32 %v1053_v17 }
 0x437   :  { %1652 = vrcp.f32 %v1072_v21  ;;  %v1084_v46 = vand.u32 2147483648, %v1072_v21  ;;  %v1082_v9 = vand.u32 2147483647, %v1072_v21  ;;  %vm1078_vm9 = vweird.f32 %v1072_v21 }
 0x438   :  { %v1066_v58 = vor.u32 1.1754944e-38, %v1065_v5  ;;  %vm1064_vm12 = vcmp.eq.f32.partialorder %v1063_v22, 8.507059e+37 }
 0x439   :  { %v1085_v60 = vor.u32 1.1754944e-38, %v1084_v46  ;;  %vm1083_vm13 = vcmp.eq.f32.partialorder %v1082_v9, 8.507059e+37 }
 0x43a   :  { %v1649_v37 = vpop.eup %1648 }
 0x43b   :  { %v1092_v38 = vadd.f32 1.0, %v1649_v37 }
 0x43c   :  { %v1651_v34 = vpop.eup %1650 }
 0x43d   :  { %v1653_v50 = vpop.eup %1652  ;;  %v1055_v55 = vmul.f32 %v1651_v34, %v1053_v17  ;;  %1654 = vrcp.f32 %v1092_v38  ;;  %vm1060_vm3 = vweird.f32 %v1651_v34  ;;  %v1104_v16 = vand.u32 2147483648, %v1092_v38 }
 0x43e   :  { %v1074_v59 = vmul.f32 %v1653_v50, %v1072_v21  ;;  %1656 = vtanh.f32 %v1048_v49  ;;  %vm1079_vm6 = vweird.f32 %v1653_v50  ;;  %vm1061_vm10 = vmor %vm1059_vm8, %vm1060_vm3  ;;  %vm1098_vm15 = vweird.f32 %v1092_v38 }
 0x43f   :  { %v1056_v1 = vsub.f32 1.0, %v1055_v55  ;;  %vm1080_vm11 = vmor %vm1078_vm9, %vm1079_vm6  ;;  %v1102_v35 = vand.u32 2147483647, %v1092_v38  ;;  %v1105_v6 = vor.u32 1.1754944e-38, %v1104_v16 }
 0x440   :  { %v1075_v4 = vsub.f32 1.0, %v1074_v59 }
 0x441   :  { %v1057_v53 = vmul.f32 %v1651_v34, %v1056_v1  ;;  %vm1103_vm1 = vcmp.eq.f32.partialorder %v1102_v35, 8.507059e+37 }
 0x442   :  { %v1076_v48 = vmul.f32 %v1653_v50, %v1075_v4 }
 0x443   :  { %v1655_v30 = vpop.eup %1654  ;;  %v1058_v23 = vadd.f32 %v1651_v34, %v1057_v53 }
 0x444   :  { %v1077_v20 = vadd.f32 %v1653_v50, %v1076_v48  ;;  %v1094_v56 = vmul.f32 %v1655_v30, %v1092_v38  ;;  %v1657_v2 = vpop.eup %1656  ;;  %vm1099_vm14 = vweird.f32 %v1655_v30 }
 0x445   :  { %v1062_v33 = vsel %vm1061_vm10, %v1651_v34, %v1058_v23  ;;  %vm1100_vm0 = vmor %vm1098_vm15, %vm1099_vm14 }
 0x446   :  { %v1067_v8 = vsel %vm1064_vm12, %v1066_v58, %v1062_v33  ;;  %v1081_v44 = vsel %vm1080_vm11, %v1653_v50, %v1077_v20  ;;  %v1095_v36 = vsub.f32 1.0, %v1094_v56 }
 0x447   :  { %v1086_v52 = vsel %vm1083_vm13, %v1085_v60, %v1081_v44  ;;  %v1112_v26 = vmul.f32 %v1657_v2, %v1067_v8 }
 0x448   :  { %v1111_v29 = vmul.f32 %v1109_v15, %v1086_v52  ;;  %v1096_v42 = vmul.f32 %v1655_v30, %v1095_v36 }
 0x44a   :  { %v2290_v63 = vadd.f32 %v1112_v26, %v1111_v29  ;;  %v1097_v41 = vadd.f32 %v1655_v30, %v1096_v42 }
 0x44c   :  { %1658 = vtanh.f32 %v2290_v63  ;;  %v1101_v27 = vsel %vm1100_vm0, %v1655_v30, %v1097_v41  ;;  %v1247_v36 = vrot.slane %v2290_v63, 6 }
 0x44d   :  { %v1106_v19 = vsel %vm1103_vm1, %v1105_v6, %v1101_v27 }
 0x452   :  { %v1659_v13 = vpop.eup %1658 }
 0x453   :  { %v2293_v24 = vmul.f32 %v1659_v13, %v1106_v19 }
 0x455   :  { %v1116_v32 = vpack.c.bf16 %v2293_v24, %v2293_v24 }
 0x457   :  { %v1118_v39 = vrot.slane %v1116_v32, 1 }
 0x459   :  { %1128 = vmatmul.bf16.vlgmr.msra.gmra.mxu0 %v1118_v39  ;;  %1141 = vmatmul.bf16.vlgmr.msra.gmra.mxu1 %v1118_v39 }
 0x45a   :  { %1154 = vmatmul.bf16.vlgmr.msrb.gmra.mxu2 %v1118_v39  ;;  %1167 = vmatmul.bf16.vlgmr.msrb.gmra.mxu3 %v1118_v39 }
 0x4d6   :  { %v1129_v43 = vpop.f32.mrf.mxu0  ;;  %v1142_v47 = vpop.f32.mrf.mxu1 }
 0x4d7   :  { %v1176_v51 = vrot.slane %v1129_v43, 4  ;;  %v1177_v54 = vrot.slane %v1142_v47, 4 }
 0x4d9   :  { %v1184_v57 = vadd.f32 %v1176_v51, %v2363_v62  ;;  %v1185_v61 = vadd.f32 %v1177_v54, %v2364_v45 }
 0x4db   :  { %v1550_v0 = vmul.f32 -1.442695, %v1184_v57  ;;  %v1551_v3 = vmul.f32 -1.442695, %v1185_v61  ;;  %v1398_v61 = vsel %vm1392_vm5, %v2249_v12, %v2293_v24 }
 0x4dd   :  { %1660 = vpow2.f32 %v1550_v0  ;;  %v1155_v7 = vpop.f32.mrf.mxu2  ;;  %v1168_v10 = vpop.f32.mrf.mxu3 }
 0x4de   :  { %1662 = vpow2.f32 %v1551_v3  ;;  %v1179_v14 = vrot.slane %v1168_v10, 4  ;;  %v1131_v17 = vpop.f32.mrf.mxu0  ;;  %v1144_v21 = vpop.f32.mrf.mxu1  ;;  %v1178_v55 = vrot.slane %v1155_v7, 4 }
 0x4e0   :  { %v1187_v25 = vadd.f32 %v1179_v14, %v2365_v40  ;;  %v1186_v5 = vadd.f32 %v1178_v55, %v2366_v18 }
 0x4e2   :  { %v1552_v28 = vmul.f32 -1.442695, %v1187_v25 }
 0x4e3   :  { %v1661_v31 = vpop.eup %1660 }
 0x4e4   :  { %v1663_v37 = vpop.eup %1662  ;;  %v1191_v38 = vadd.f32 1.0, %v1661_v31  ;;  %1664 = vpow2.f32 %v1552_v28 }
 0x4e5   :  { %v1210_v34 = vadd.f32 1.0, %v1663_v37  ;;  %v1157_v49 = vpop.f32.mrf.mxu2  ;;  %v1170_v50 = vpop.f32.mrf.mxu3 }
 0x4e6   :  { %1666 = vrcp.f32 %v1191_v38  ;;  %v1203_v30 = vand.u32 2147483648, %v1191_v38  ;;  %v1201_v20 = vand.u32 2147483647, %v1191_v38  ;;  %vm1197_vm6 = vweird.f32 %v1191_v38 }
 0x4e7   :  { %1668 = vrcp.f32 %v1210_v34  ;;  %v1222_v23 = vand.u32 2147483648, %v1210_v34  ;;  %v1220_v15 = vand.u32 2147483647, %v1210_v34  ;;  %vm1216_vm8 = vweird.f32 %v1210_v34 }
 0x4e8   :  { %v1204_v2 = vor.u32 1.1754944e-38, %v1203_v30  ;;  %vm1202_vm11 = vcmp.eq.f32.partialorder %v1201_v20, 8.507059e+37  ;;  %v1457_v30 = vld [vmem:[#allocation6 + $0x50] sm:$0xff] }
 0x4e9   :  { %v1223_v52 = vor.u32 1.1754944e-38, %v1222_v23  ;;  %vm1221_vm12 = vcmp.eq.f32.partialorder %v1220_v15, 8.507059e+37  ;;  %v1456_v23 = vld [vmem:[#allocation6 + $0x48] sm:$0xff]  ;;  %v1454_v15 = vld [vmem:[#allocation6 + $0x38] sm:$0xff] }
 0x4ea   :  { %v1665_v59 = vpop.eup %1664 }
 0x4eb   :  { %v1230_v1 = vadd.f32 1.0, %v1665_v59  ;;  %v1460_v59 = vld [vmem:[#allocation6 + $0x68] sm:$0xff] }
 0x4ec   :  { %v1667_v4 = vpop.eup %1666 }
 0x4ed   :  { %v1669_v46 = vpop.eup %1668  ;;  %v1193_v53 = vmul.f32 %v1667_v4, %v1191_v38  ;;  %1670 = vrcp.f32 %v1230_v1  ;;  %vm1198_vm2 = vweird.f32 %v1667_v4  ;;  %v1242_v63 = vand.u32 2147483648, %v1230_v1  ;;  %v1462_v38 = vld [vmem:[#allocation6 + $0x78] sm:$0xff] }
 0x4ee   :  { %v1212_v22 = vmul.f32 %v1669_v46, %v1210_v34  ;;  %1672 = vtanh.f32 %v1186_v5  ;;  %vm1217_vm3 = vweird.f32 %v1669_v46  ;;  %vm1199_vm9 = vmor %vm1197_vm6, %vm1198_vm2  ;;  %vm1236_vm14 = vweird.f32 %v1230_v1  ;;  %v1461_v34 = vld [vmem:[#allocation6 + $0x70] sm:$0xff]  ;;  %1467 = vmatpush.msra.mxu0 %v1462_v38  ;;  %v1458_v5 = vld [vmem:[#allocation6 + $0x58] sm:$0xff] }
 0x4ef   :  { %v1194_v48 = vsub.f32 1.0, %v1193_v53  ;;  %vm1218_vm10 = vmor %vm1216_vm8, %vm1217_vm3  ;;  %v1240_v39 = vand.u32 2147483647, %v1230_v1  ;;  %v1243_v47 = vor.u32 1.1754944e-38, %v1242_v63  ;;  %v1450_v63 = vld [vmem:[#allocation6 + $0x18] sm:$0xff] }
 0x4f0   :  { %v1213_v9 = vsub.f32 1.0, %v1212_v22  ;;  %1468 = vmatpush.msra.mxu0 %v1461_v34 }
 0x4f1   :  { %v1195_v58 = vmul.f32 %v1667_v4, %v1194_v48  ;;  %vm1241_vm0 = vcmp.eq.f32.partialorder %v1240_v39, 8.507059e+37 }
 0x4f2   :  { %v1214_v56 = vmul.f32 %v1669_v46, %v1213_v9  ;;  %1469 = vmatpush.msra.mxu0 %v1460_v59 }
 0x4f3   :  { %v1671_v60 = vpop.eup %1670  ;;  %v1196_v33 = vadd.f32 %v1667_v4, %v1195_v58 }
 0x4f4   :  { %v1215_v8 = vadd.f32 %v1669_v46, %v1214_v56  ;;  %v1232_v44 = vmul.f32 %v1671_v60, %v1230_v1  ;;  %v1673_v29 = vpop.eup %1672  ;;  %vm1237_vm13 = vweird.f32 %v1671_v60 }
 0x4f5   :  { %v1200_v26 = vsel %vm1199_vm9, %v1667_v4, %v1196_v33  ;;  %vm1238_vm15 = vmor %vm1236_vm14, %vm1237_vm13  ;;  %v1459_v4 = vld [vmem:[#allocation6 + $0x60] sm:$0xff] }
 0x4f6   :  { %v1205_v42 = vsel %vm1202_vm11, %v1204_v2, %v1200_v26  ;;  %v1219_v41 = vsel %vm1218_vm10, %v1669_v46, %v1215_v8  ;;  %v1233_v16 = vsub.f32 1.0, %v1232_v44  ;;  %1470 = vmatpush.msra.mxu0 %v1459_v4  ;;  %v1453_v44 = vld [vmem:[#allocation6 + $0x30] sm:$0xff]  ;;  %v1452_v26 = vld [vmem:[#allocation6 + $0x28] sm:$0xff] }
 0x4f7   :  { %v1224_v35 = vsel %vm1221_vm12, %v1223_v52, %v1219_v41  ;;  %v1250_v27 = vmul.f32 %v1673_v29, %v1205_v42 }
 0x4f8   :  { %v1249_v6 = vmul.f32 %v1247_v36, %v1224_v35  ;;  %v1234_v13 = vmul.f32 %v1671_v60, %v1233_v16  ;;  %1471 = vmatpush.msra.mxu0 %v1458_v5 }
 0x4fa   :  { %v2302_v19 = vadd.f32 %v1250_v27, %v1249_v6  ;;  %v1235_v32 = vadd.f32 %v1671_v60, %v1234_v13  ;;  %1472 = vmatpush.msra.mxu0 %v1457_v30  ;;  %v1451_v27 = vld [vmem:[#allocation6 + $0x20] sm:$0xff] }
 0x4fc   :  { %1674 = vtanh.f32 %v2302_v19  ;;  %v1239_v43 = vsel %vm1238_vm15, %v1671_v60, %v1235_v32  ;;  %1473 = vmatpush.msra.mxu0 %v1456_v23 }
 0x4fd   :  { %v1244_v54 = vsel %vm1241_vm0, %v1243_v47, %v1239_v43 }
 0x502   :  { %v1675_v51 = vpop.eup %1674 }
 0x503   :  { %v1253_v57 = vmul.f32 %v1675_v51, %v1244_v54  ;;  %v1385_v51 = vrot.slane %v2302_v19, 6 }
 0x505   :  { %v1254_v0 = vpack.c.bf16 %v1253_v57, %v1253_v57  ;;  %v2309_v3 = vsel %vm1394_vm7, %v1398_v61, %v1253_v57  ;;  %v1449_v61 = vld [vmem:[#allocation6 + $0x10] sm:$0xff] }
 0x507   :  { %v1256_v7 = vrot.slane %v1254_v0, 2 }
 0x509   :  { %1266 = vmatmul.bf16.vlgmr.msrb.gmra.mxu0 %v1256_v7  ;;  %1279 = vmatmul.bf16.vlgmr.msrb.gmra.mxu1 %v1256_v7 }
 0x50a   :  { %1292 = vmatmul.bf16.vlgmr.msra.gmra.mxu2 %v1256_v7  ;;  %1305 = vmatmul.bf16.vlgmr.msra.gmra.mxu3 %v1256_v7 }
 0x586   :  { %v1267_v10 = vpop.f32.mrf.mxu0  ;;  %v1280_v14 = vpop.f32.mrf.mxu1 }
 0x587   :  { %v1314_v17 = vrot.slane %v1267_v10, 2  ;;  %v1315_v21 = vrot.slane %v1280_v14, 2 }
 0x589   :  { %v1322_v25 = vadd.f32 %v1314_v17, %v2363_v62  ;;  %v1323_v28 = vadd.f32 %v1315_v21, %v2364_v45 }
 0x58b   :  { %v1553_v31 = vmul.f32 -1.442695, %v1322_v25  ;;  %v1554_v37 = vmul.f32 -1.442695, %v1323_v28  ;;  %v1448_v25 = vld [vmem:[#allocation6 + $0x8] sm:$0xff] }
 0x58d   :  { %1676 = vpow2.f32 %v1553_v31  ;;  %v1293_v12 = vpop.f32.mrf.mxu2  ;;  %v1306_v24 = vpop.f32.mrf.mxu3 }
 0x58e   :  { %1678 = vpow2.f32 %v1554_v37  ;;  %v1317_v49 = vrot.slane %v1306_v24, 2  ;;  %v1269_v50 = vpop.f32.mrf.mxu0  ;;  %v1282_v55 = vpop.f32.mrf.mxu1  ;;  %v1316_v58 = vrot.slane %v1293_v12, 2  ;;  %v1447_v37 = vld [vmem:[#allocation6] sm:$0xff] }
 0x590   :  { %v1325_v1 = vadd.f32 %v1317_v49, %v2365_v40  ;;  %v1455_v40 = vld [vmem:[#allocation6 + $0x40] sm:$0xff]  ;;  %v1324_v33 = vadd.f32 %v1316_v58, %v2366_v18 }
 0x591   :  { %1474 = vmatpush.msra.mxu0 %v1455_v40 }
 0x592   :  { %v1555_v62 = vmul.f32 -1.442695, %v1325_v1 }
 0x593   :  { %v1677_v45 = vpop.eup %1676  ;;  %1475 = vmatpush.msra.mxu0 %v1454_v15 }
 0x594   :  { %v1679_v46 = vpop.eup %1678  ;;  %v1329_v53 = vadd.f32 1.0, %v1677_v45  ;;  %1680 = vpow2.f32 %v1555_v62  ;;  %v1408_v62 = vmul.f32 %v2207_v11, %v2207_v11 }
 0x595   :  { %v1348_v22 = vadd.f32 1.0, %v1679_v46  ;;  %v1295_v48 = vpop.f32.mrf.mxu2  ;;  %v1308_v9 = vpop.f32.mrf.mxu3  ;;  %1476 = vmatpush.msra.mxu0 %v1453_v44 }
 0x596   :  { %1682 = vrcp.f32 %v1329_v53  ;;  %v1341_v42 = vand.u32 2147483648, %v1329_v53  ;;  %v1339_v35 = vand.u32 2147483647, %v1329_v53  ;;  %vm1335_vm1 = vweird.f32 %v1329_v53 }
 0x597   :  { %1684 = vrcp.f32 %v1348_v22  ;;  %v1360_v41 = vand.u32 2147483648, %v1348_v22  ;;  %v1358_v6 = vand.u32 2147483647, %v1348_v22  ;;  %1477 = vmatpush.msra.mxu0 %v1452_v26  ;;  %vm1354_vm2 = vweird.f32 %v1348_v22 }
 0x598   :  { %v1342_v39 = vor.u32 1.1754944e-38, %v1341_v42  ;;  %vm1340_vm8 = vcmp.eq.f32.partialorder %v1339_v35, 8.507059e+37  ;;  %v1421_v42 = vld [vmem:[%s2350_s6] sm:$0x1] }
 0x599   :  { %1478 = vmatpush.msra.mxu0 %v1451_v27  ;;  %v1361_v54 = vor.u32 1.1754944e-38, %v1360_v41  ;;  %vm1359_vm9 = vcmp.eq.f32.partialorder %v1358_v6, 8.507059e+37  ;;  %v1434_v27 = vld [vmem:[%s2351_s7] sm:$0x1] }
 0x59a   :  { %v1681_v20 = vpop.eup %1680 }
 0x59b   :  { %v2314_v56 = vadd.f32 1.0, %v1681_v20  ;;  %1479 = vmatpush.msra.mxu0 %v1450_v63 }
 0x59c   :  { %v1683_v60 = vpop.eup %1682 }
 0x59d   :  { %v1685_v2 = vpop.eup %1684  ;;  %v1331_v8 = vmul.f32 %v1683_v60, %v1329_v53  ;;  %1686 = vrcp.f32 %v2314_v56  ;;  %vm1336_vm5 = vweird.f32 %v1683_v60  ;;  %1480 = vmatpush.msra.mxu0 %v1449_v61  ;;  %v1380_v24 = vand.u32 2147483648, %v2314_v56 }
 0x59e   :  { %v1350_v36 = vmul.f32 %v1685_v2, %v1348_v22  ;;  %1688 = vtanh.f32 %v1324_v33  ;;  %vm1355_vm7 = vweird.f32 %v1685_v2  ;;  %vm1337_vm3 = vmor %vm1335_vm1, %vm1336_vm5  ;;  %vm1374_vm11 = vweird.f32 %v2314_v56 }
 0x59f   :  { %v1332_v52 = vsub.f32 1.0, %v1331_v8  ;;  %vm1356_vm6 = vmor %vm1354_vm2, %vm1355_vm7  ;;  %1481 = vmatpush.msra.mxu0 %v1448_v25  ;;  %v1378_v38 = vand.u32 2147483647, %v2314_v56  ;;  %v1381_v49 = vor.u32 1.1754944e-38, %v1380_v24 }
 0x5a0   :  { %v1351_v29 = vsub.f32 1.0, %v1350_v36 }
 0x5a1   :  { %v1333_v16 = vmul.f32 %v1683_v60, %v1332_v52  ;;  %1482 = vmatpush.msra.mxu0 %v1447_v37  ;;  %vm1379_vm13 = vcmp.eq.f32.partialorder %v1378_v38, 8.507059e+37 }
 0x5a2   :  { %v1352_v18 = vmul.f32 %v1685_v2, %v1351_v29 }
 0x5a3   :  { %v1687_v13 = vpop.eup %1686  ;;  %v1334_v32 = vadd.f32 %v1683_v60, %v1333_v16 }
 0x5a4   :  { %v1353_v43 = vadd.f32 %v1685_v2, %v1352_v18  ;;  %v1370_v47 = vmul.f32 %v1687_v13, %v2314_v56  ;;  %v1689_v0 = vpop.eup %1688  ;;  %vm1375_vm10 = vweird.f32 %v1687_v13 }
 0x5a5   :  { %v1338_v57 = vsel %vm1337_vm3, %v1683_v60, %v1334_v32  ;;  %vm1376_vm12 = vmor %vm1374_vm11, %vm1375_vm10 }
 0x5a6   :  { %v1343_v7 = vsel %vm1340_vm8, %v1342_v39, %v1338_v57  ;;  %v1357_v10 = vsel %vm1356_vm6, %v1685_v2, %v1353_v43  ;;  %v1371_v14 = vsub.f32 1.0, %v1370_v47 }
 0x5a7   :  { %v1362_v17 = vsel %vm1359_vm9, %v1361_v54, %v1357_v10  ;;  %v1388_v21 = vmul.f32 %v1689_v0, %v1343_v7 }
 0x5a8   :  { %v1387_v28 = vmul.f32 %v1385_v51, %v1362_v17  ;;  %v1372_v31 = vmul.f32 %v1687_v13, %v1371_v14  ;;  %v1563_v51 = vld [vmem:[%s2353_s9] ss:$0 sm:$0xff] }
 0x5aa   :  { %v1389_v12 = vadd.f32 %v1388_v21, %v1387_v28  ;;  %v1373_v19 = vadd.f32 %v1687_v13, %v1372_v31 }
 0x5ac   :  { %1690 = vtanh.f32 %v1389_v12  ;;  %v1377_v34 = vsel %vm1376_vm12, %v1687_v13, %v1373_v19 }
 0x5ad   :  { %v1382_v55 = vsel %vm1379_vm13, %v1381_v49, %v1377_v34 }
 0x5b2   :  { %v1691_v50 = vpop.eup %1690 }
 0x5b3   :  { %v1391_v59 = vmul.f32 %v1691_v50, %v1382_v55 }
 0x5b5   :  { %v1400_v1 = vsel %vm1396_vm4, %v2309_v3, %v1391_v59 }
 0x5b6   :  { %v1401_v4 = vadd.f32 %v1400_v1, %v2207_v11  ;;  %v1409_v45 = vmul.f32 %v1400_v1, %v1400_v1 }
 0x5b8   :  { %v1402_v5 = vrot.slane %v1401_v4, 4  ;;  %v1410_v46 = vadd.f32 %v1409_v45, %v1408_v62 }
 0x5ba   :  { %v1403_v53 = vadd.f32 %v1402_v5, %v1401_v4  ;;  %v1411_v22 = vrot.slane %v1410_v46, 4 }
 0x5bc   :  { %v1404_v48 = vrot.slane %v1403_v53, 2  ;;  %v1412_v9 = vadd.f32 %v1411_v22, %v1410_v46 }
 0x5be   :  { %v1405_v30 = vadd.f32 %v1404_v48, %v1403_v53  ;;  %v1413_v23 = vrot.slane %v1412_v9, 2 }
 0x5c0   :  { %v1406_v58 = vrot.slane %v1405_v30, 1  ;;  %v1414_v40 = vadd.f32 %v1413_v23, %v1412_v9 }
 0x5c2   :  { %v1407_v20 = vadd.f32 %v1406_v58, %v1405_v30  ;;  %v1415_v56 = vrot.slane %v1414_v40, 1 }
 0x5c4   :  { %v1416_v15 = vadd.f32 %v1415_v56, %v1414_v40  ;;  %v1417_v3 = vmul.f32 0.0625, %v1407_v20 }
 0x5c6   :  { %v1418_v60 = vmul.f32 0.0625, %v1416_v15  ;;  %v1419_v33 = vmul.f32 %v1417_v3, %v1417_v3 }
 0x5c8   :  { %v1420_v2 = vsub.f32 %v1418_v60, %v1419_v33 }
 0x5ca   :  { %v1422_v8 = vadd.f32 1e-05, %v1420_v2 }
 0x5cc   :  { %1692 = vrsqrt.f32 %v1422_v8  ;;  %vm1429_vm14 = vweird.f32 %v1422_v8 }
 0x5d2   :  { %v1693_v44 = vpop.eup %1692 }
 0x5d3   :  { %v1424_v36 = vmul.f32 %v1693_v44, %v1422_v8  ;;  %vm1430_vm4 = vweird.f32 %v1693_v44 }
 0x5d4   :  { %vm1431_vm15 = vmor %vm1429_vm14, %vm1430_vm4 }
 0x5d5   :  { %v1425_v52 = vmul.f32 %v1693_v44, %v1424_v36 }
 0x5d7   :  { %v1426_v26 = vmul.f32 0.5, %v1425_v52 }
 0x5d9   :  { %v1427_v29 = vsub.f32 1.5, %v1426_v26 }
 0x5db   :  { %v1428_v41 = vmul.f32 %v1693_v44, %v1427_v29 }
 0x5dd   :  { %v1432_v16 = vsel %vm1431_vm15, %v1693_v44, %v1428_v41 }
 0x5de   :  { %v1433_v35 = vmul.f32 %v1432_v16, %v1421_v42 }
 0x5e0   :  { %v1435_v18 = vmul.f32 %v1433_v35, %v1417_v3  ;;  %v1438_v6 = vperm.slane %v1433_v35, 0 }
 0x5e2   :  { %v1436_v13 = vsub.f32 %v1434_v27, %v1435_v18  ;;  %v1440_v32 = vmul.f32 %v1438_v6, %v2207_v11  ;;  %v1441_v63 = vmul.f32 %v1438_v6, %v1400_v1 }
 0x5e4   :  { %v1443_v39 = vperm.slane %v1436_v13, 0 }
 0x5e6   :  { %v1445_v43 = vadd.f32 %v1443_v39, %v1440_v32  ;;  %v1446_v47 = vadd.f32 %v1443_v39, %v1441_v63 }
 0x5e8   :  { %1483 = vmatmul.f32.vlgmr.msra.gmra.mxu0 %v1445_v43 }
 0x5f0   :  { %1486 = vmatmul.f32.gmra.mxu0 %v1446_v47 }
 0x665   :  { %v1484_v54 = vpop.f32.mrf.mxu0 }
 0x666   :  { %v1485_v57 = vadd.f32 %v1563_v51, %v1484_v54 }
 0x668   :  { %1490 = vmax.xlane.f32.xlu0 %v1485_v57 }
 0x66d   :  { %v1487_v61 = vpop.f32.mrf.mxu0 }
 0x66e   :  { %v1488_v0 = vadd.f32 %v1563_v51, %v1487_v61 }
 0x670   :  { %1492 = vmax.xlane.f32.xlu0 %v1488_v0 }
 0x6db   :  { %v1491_v7 = vpop.xlane.xlu0 %1490 }
 0x6dc   :  { %v1494_v10 = vsub.f32 %v1485_v57, %v1491_v7 }
 0x6de   :  { %v1496_v14 = vmul.f32 1.442695, %v1494_v10 }
 0x6e0   :  { %1694 = vpow2.f32 %v1496_v14 }
 0x6e3   :  { %v1493_v11 = vpop.xlane.xlu0 %1492 }
 0x6e4   :  { %v1495_v17 = vsub.f32 %v1488_v0, %v1493_v11 }
 0x6e6   :  { %v1695_v21 = vpop.eup %1694  ;;  %v1498_v25 = vmul.f32 1.442695, %v1495_v17 }
 0x6e7   :  { %1500 = vadd.xlane.f32.xlu1 %v1695_v21 }
 0x6e8   :  { %1696 = vpow2.f32 %v1498_v25 }
 0x6ee   :  { %v1697_v28 = vpop.eup %1696 }
 0x6ef   :  { %1502 = vadd.xlane.f32.xlu1 %v1697_v28 }
 0x75a   :  { %v1501_v31 = vpop.xlane.xlu1 %1500 }
 0x75b   :  { %1698 = vlog2.f32 %v1501_v31 }
 0x761   :  { %v1699_v37 = vpop.eup %1698 }
 0x762   :  { %v1505_v12 = vmul.f32 0.6931472, %v1699_v37  ;;  %v1503_v19 = vpop.xlane.xlu1 %1502 }
 0x763   :  { %1700 = vlog2.f32 %v1503_v19 }
 0x764   :  { %v1508_v24 = vadd.f32 %v1505_v12, %v1491_v7 }
 0x766   :  { %v1510_v38 = vsub.f32 %v1485_v57, %v1508_v24 }
 0x768   :  { %1512 = vst [vmem:[%s2354_s10] sm:$0xff] %v1510_v38 }
 0x769   :  { %v1701_v34 = vpop.eup %1700 }
 0x76a   :  { %v1507_v49 = vmul.f32 0.6931472, %v1701_v34 }
 0x76c   :  { %v1509_v50 = vadd.f32 %v1507_v49, %v1493_v11 }
 0x76e   :  { %v1511_v55 = vsub.f32 %v1488_v0, %v1509_v50 }
 0x770   :  { %1513 = vst [vmem:[%s2354_s10 + $0x8] sm:$0xff] %v1511_v55 }
 0x771   :  { %1518 = vsyncpa [#allocation3], 1 }
 0x772   :  { %1519 = vsyncpa [#allocation5], 1 }

</bundles_post_ra>
